<compile_context>
chip_gen: v7x
topology: tpu7x:2x2x1
jax: 0.10.0
libtpu: 0.0.40
codegen_flags: <defaults>
</compile_context>

<pallas_src>
import math

import jax
import jax.numpy as jnp
from jax.experimental import pallas as pl
from jax.experimental.pallas import tpu as pltpu

GROUPS = 32
EPS = 1e-5  # PyTorch GroupNorm default


def _choose_tiles(hw):
    """Return (TQ, TK, padded HW). Full extent if small, else 512-row tiles."""
    if hw <= 512:
        return hw, hw, hw
    blk = 512  # multiple of 256: fills v6e/v7x 2x256^2 MXU; fine on v5e too.
    hwp = ((hw + blk - 1) // blk) * blk
    return blk, blk, hwp


def _vmem_limit_bytes(tq, tk, c):
    """Generation-aware VMEM budget for the chosen tiles."""
    f32, bf16 = 4, 2
    need = (
        2 * tq * c * f32                      # x (q rows), double buffered
        + 2 * tk * c * f32                    # x (kv rows)
        + 2 * tq * c * f32                    # y out
        + 2 * (2 * c * c * bf16 + c * 2 * c * bf16)   # Wq, Wp, Wkv (dbl buf)
        + 2 * (8 * c * f32)                   # biases + scale/shift
        + tq * c * (f32 + bf16)               # xn_q f32 + q bf16 scratch
        + tk * c * (f32 + 2 * bf16)           # xn_k + k + v
        + tq * tk * (2 * f32 + bf16)          # s, p, p(bf16)
        + tq * c * (2 * f32 + bf16)           # acc scratch + out temp + o bf16
        + 2 * tq * f32                        # m_i, l_i
    )
    need = int(need * 1.5) + (2 << 20)
    try:
        cap = int(pltpu.get_tpu_info().vmem_capacity_bytes)
    except Exception:
        cap = 64 << 20  # conservative: v7x per-core VMEM
    return max(min(need, int(cap * 0.85)), 16 << 20)


def _make_kernel(HW, C, TQ, TK, mask_kv):
    def kernel(xq_ref, xk_ref, scale_ref, shift_ref,
               wq_ref, bq_ref, wkv_ref, bkv_ref, wp_ref, bp_ref,
               y_ref, q_buf, m_i, l_i, acc):
        ki = pl.program_id(2)

        # ---- init for this (batch, q-block): project q once, reset acc -----
        @pl.when(ki == 0)
        def _init():
            xn_q = xq_ref[0] * scale_ref[0] + shift_ref[0]          # (TQ, C) f32
            q = jnp.dot(xn_q.astype(jnp.bfloat16), wq_ref[...],
                        preferred_element_type=jnp.float32) + bq_ref[...]
            q_buf[...] = q.astype(jnp.bfloat16)     # gamma/beta & 1/sqrt(C) folded
            m_i[...] = jnp.full((TQ, 1), -jnp.inf, jnp.float32)
            l_i[...] = jnp.zeros((TQ, 1), jnp.float32)
            acc[...] = jnp.zeros((TQ, C), jnp.float32)

        # ---- this kv chunk: normalize + fused K/V projection (bf16 asap) ---
        xn_k = (xk_ref[0] * scale_ref[0] + shift_ref[0]).astype(jnp.bfloat16)
        kv = jnp.dot(xn_k, wkv_ref[...],
                     preferred_element_type=jnp.float32) + bkv_ref[...]  # (TK, 2C)
        k = kv[:, :C].astype(jnp.bfloat16)
        v = kv[:, C:].astype(jnp.bfloat16)

        # scores via dot_general contracting the channel axis (no explicit k.T)
        s = jax.lax.dot_general(q_buf[...], k,
                                dimension_numbers=(((1,), (1,)), ((), ())),
                                preferred_element_type=jnp.float32)      # (TQ, TK)
        if mask_kv:  # padded kv columns -> -inf (static flag; only when HW padded)
            col = ki * TK + jax.lax.broadcasted_iota(jnp.int32, (TQ, TK), 1)
            s = jnp.where(col < HW, s, -jnp.inf)

        # ---- online softmax update -----------------------------------------
        c_max = jnp.max(s, axis=-1, keepdims=True)
        m_new = jnp.maximum(m_i[...], c_max)
        alpha = jnp.exp(m_i[...] - m_new)
        p = jnp.exp(s - m_new)
        l_i[...] = alpha * l_i[...] + jnp.sum(p, axis=-1, keepdims=True)
        acc[...] = alpha * acc[...] + jnp.dot(p.astype(jnp.bfloat16), v,
                                              preferred_element_type=jnp.float32)
        m_i[...] = m_new

        # ---- finalize: normalize (exact), output projection, residual ------
        @pl.when(ki == pl.num_programs(2) - 1)
        def _finalize():
            o = (acc[...] / l_i[...]).astype(jnp.bfloat16)   # exact reciprocal
            out = jnp.dot(o, wp_ref[...],
                          preferred_element_type=jnp.float32) + bp_ref[...]
            y_ref[0] = xq_ref[0] + out

    return kernel


def attention_block(x_nchw, params):
    """x_nchw: (B, C, H, W) float32. Returns (B, C, H, W) float32."""
    B, C, H, W = x_nchw.shape
    assert C % GROUPS == 0, "GroupNorm(32, d_model) requires d_model % 32 == 0"
    HW = H * W
    gsize = C // GROUPS

    x_seq = jnp.transpose(x_nchw, (0, 2, 3, 1)).reshape(B, HW, C)

    # ---- GroupNorm stats: tiny XLA reduction (robust two-pass variance) -----
    xg = x_seq.reshape(B, HW, GROUPS, gsize)
    mu_g = jnp.mean(xg, axis=(1, 3), keepdims=True)                 # (B,1,G,1)
    var_g = jnp.mean((xg - mu_g) ** 2, axis=(1, 3), keepdims=True)
    rstd_g = jax.lax.rsqrt(var_g + EPS)
    scale_c = jnp.broadcast_to(rstd_g, (B, 1, GROUPS, gsize)).reshape(B, 1, C)
    shift_c = jnp.broadcast_to(-mu_g * rstd_g,
                               (B, 1, GROUPS, gsize)).reshape(B, 1, C)
    scale_c = scale_c.astype(jnp.float32)
    shift_c = shift_c.astype(jnp.float32)

    # ---- fold GroupNorm affine + attention scale into projection weights ----
    gamma, beta = params["gamma"], params["beta"]
    attn_scale = 1.0 / math.sqrt(C)
    wq_t, wk_t, wv_t, wp_t = (params[n].T for n in ("wq", "wk", "wv", "wp"))
    bq, bk, bv, bp = (params[n] for n in ("bq", "bk", "bv", "bp"))

    wq_f = (wq_t * gamma[:, None] * attn_scale).astype(jnp.bfloat16)   # (C, C)
    bq_f = ((beta @ wq_t + bq) * attn_scale).reshape(1, C).astype(jnp.float32)
    wkv_t = jnp.concatenate([wk_t, wv_t], axis=1)                      # (C, 2C)
    wkv_f = (wkv_t * gamma[:, None]).astype(jnp.bfloat16)
    bkv_f = (beta @ wkv_t + jnp.concatenate([bk, bv])
             ).reshape(1, 2 * C).astype(jnp.float32)
    wp_bf = wp_t.astype(jnp.bfloat16)
    bp_r = bp.reshape(1, C).astype(jnp.float32)

    # ---- tiling / padding ----------------------------------------------------
    TQ, TK, HWp = _choose_tiles(HW)
    x_pad = x_seq if HWp == HW else jnp.pad(x_seq, ((0, 0), (0, HWp - HW), (0, 0)))
    nq, nk = HWp // TQ, HWp // TK
    kernel = _make_kernel(HW, C, TQ, TK, mask_kv=(HWp != HW))

    const = lambda shape: pl.BlockSpec(shape, lambda b, qi, ki: (0,) * len(shape))

    y = pl.pallas_call(
        kernel,
        out_shape=jax.ShapeDtypeStruct((B, HWp, C), jnp.float32),
        grid_spec=pltpu.PrefetchScalarGridSpec(
            num_scalar_prefetch=0,
            grid=(B, nq, nk),
            in_specs=[
                pl.BlockSpec((1, TQ, C), lambda b, qi, ki: (b, qi, 0)),  # x (q rows)
                pl.BlockSpec((1, TK, C), lambda b, qi, ki: (b, ki, 0)),  # x (kv rows)
                pl.BlockSpec((1, 1, C), lambda b, qi, ki: (b, 0, 0)),    # GN scale
                pl.BlockSpec((1, 1, C), lambda b, qi, ki: (b, 0, 0)),    # GN shift
                const((C, C)),        # Wq (bf16, gamma & 1/sqrt(C) folded)
                const((1, C)),        # bq
                const((C, 2 * C)),    # Wkv (bf16, gamma folded)
                const((1, 2 * C)),    # bkv
                const((C, C)),        # Wp (bf16)
                const((1, C)),        # bp
            ],
            out_specs=pl.BlockSpec((1, TQ, C), lambda b, qi, ki: (b, qi, 0)),
            scratch_shapes=[
                pltpu.VMEM((TQ, C), jnp.bfloat16),   # q block (persists over kv)
                pltpu.VMEM((TQ, 1), jnp.float32),    # m_i
                pltpu.VMEM((TQ, 1), jnp.float32),    # l_i
                pltpu.VMEM((TQ, C), jnp.float32),    # acc
            ],
        ),
        compiler_params=pltpu.CompilerParams(
            dimension_semantics=("parallel", "parallel", "arbitrary"),
            vmem_limit_bytes=_vmem_limit_bytes(TQ, TK, C)),
    )(x_pad, x_pad, scale_c, shift_c, wq_f, bq_f, wkv_f, bkv_f, wp_bf, bp_r)

    y = y[:, :HW, :]
    return jnp.transpose(y.reshape(B, H, W, C), (0, 3, 1, 2))


def reference_attention_block(x, params):
    """Pure-JAX f32 reference mirroring the PyTorch module (NCHW)."""
    B, C, H, W = x.shape
    gsize = C // GROUPS
    xg = x.reshape(B, GROUPS, gsize, H, W)
    mu = xg.mean(axis=(2, 3, 4), keepdims=True)
    var = ((xg - mu) ** 2).mean(axis=(2, 3, 4), keepdims=True)
    xn = ((xg - mu) / jnp.sqrt(var + EPS)).reshape(B, C, H, W)
    xn = xn * params["gamma"].reshape(1, C, 1, 1) + params["beta"].reshape(1, C, 1, 1)

    def conv1x1(t, w, b):
        return jnp.einsum("bchw,oc->bohw", t, w) + b.reshape(1, -1, 1, 1)

    q = conv1x1(xn, params["wq"], params["bq"]).reshape(B, C, H * W).transpose(0, 2, 1)
    k = conv1x1(xn, params["wk"], params["bk"]).reshape(B, C, H * W)
    v = conv1x1(xn, params["wv"], params["bv"]).reshape(B, C, H * W).transpose(0, 2, 1)
    attn = jax.nn.softmax(jnp.einsum("bqc,bck->bqk", q, k) / math.sqrt(C), axis=-1)
    o = jnp.einsum("bqk,bkc->bqc", attn, v).transpose(0, 2, 1).reshape(B, C, H, W)
    o = conv1x1(o, params["wp"], params["bp"])
    return x + o


def make_params(key, d_model):
    ks = jax.random.split(key, 8)

    def w(k):
        return jax.random.normal(k, (d_model, d_model), jnp.float32) * 0.05

    def b(k):
        return jax.random.normal(k, (d_model,), jnp.float32) * 0.01

    return {
        "gamma": jnp.ones((d_model,), jnp.float32),   # PyTorch GroupNorm init
        "beta": jnp.zeros((d_model,), jnp.float32),
        "wq": w(ks[0]), "bq": b(ks[1]),
        "wk": w(ks[2]), "bk": b(ks[3]),
        "wv": w(ks[4]), "bv": b(ks[5]),
        "wp": w(ks[6]), "bp": b(ks[7]),
    }


if __name__ == "__main__":
    # d_model must be divisible by 32 (GroupNorm); 128 keeps the output lane-dense.
    B, d_model, H, W = 2, 128, 8, 8
    key = jax.random.PRNGKey(0)
    kx, kp = jax.random.split(key)
    x = jax.random.normal(kx, (B, d_model, H, W), jnp.float32)
    params = make_params(kp, d_model)

    y = attention_block(x, params)
    jax.block_until_ready(y)

    y_ref = reference_attention_block(x, params)
    assert y.shape == x.shape and y.dtype == x.dtype
    # bf16 MXU operands -> looser tolerance than pure f32.
    assert jnp.allclose(y, y_ref, atol=3e-2, rtol=3e-2), (
        float(jnp.max(jnp.abs(y - y_ref))))
    print("KERNEL_OK")
</pallas_src>

<mosaic_0001>
module attributes {stable_mosaic.version = 11 : i64} {
  func.func @kernel(%arg0: i32, %arg1: i32, %arg2: i32, %arg3: memref<1x64x128xf32, #tpu.memory_space<vmem>>, %arg4: memref<1x64x128xf32, #tpu.memory_space<vmem>>, %arg5: memref<1x1x128xf32, #tpu.memory_space<vmem>>, %arg6: memref<1x1x128xf32, #tpu.memory_space<vmem>>, %arg7: memref<128x128xbf16, #tpu.memory_space<vmem>>, %arg8: memref<1x128xf32, #tpu.memory_space<vmem>>, %arg9: memref<128x256xbf16, #tpu.memory_space<vmem>>, %arg10: memref<1x256xf32, #tpu.memory_space<vmem>>, %arg11: memref<128x128xbf16, #tpu.memory_space<vmem>>, %arg12: memref<1x128xf32, #tpu.memory_space<vmem>>, %arg13: memref<1x64x128xf32, #tpu.memory_space<vmem>>, %arg14: memref<64x128xbf16, #tpu.memory_space<vmem>>, %arg15: memref<64x1xf32, #tpu.memory_space<vmem>>, %arg16: memref<64x1xf32, #tpu.memory_space<vmem>>, %arg17: memref<64x128xf32, #tpu.memory_space<vmem>>) attributes {dimension_semantics = [#tpu.dimension_semantics<parallel>, #tpu.dimension_semantics<parallel>, #tpu.dimension_semantics<arbitrary>], iteration_bounds = array<i64: 2, 1, 1>, scalar_prefetch = 0 : i64, scratch_operands = 4 : i64, tpu.core_type = #tpu.core_type<tc>, window_params = [{transform_indices = @transform_0, window_bounds = array<i64: 1, 64, 128>}, {transform_indices = @transform_1, window_bounds = array<i64: 1, 64, 128>}, {transform_indices = @transform_2, window_bounds = array<i64: 1, 1, 128>}, {transform_indices = @transform_3, window_bounds = array<i64: 1, 1, 128>}, {pipeline_mode = #tpu.pipeline_mode<synchronous>, transform_indices = @transform_4, window_bounds = array<i64: 128, 128>}, {pipeline_mode = #tpu.pipeline_mode<synchronous>, transform_indices = @transform_5, window_bounds = array<i64: 1, 128>}, {pipeline_mode = #tpu.pipeline_mode<synchronous>, transform_indices = @transform_6, window_bounds = array<i64: 128, 256>}, {pipeline_mode = #tpu.pipeline_mode<synchronous>, transform_indices = @transform_7, window_bounds = array<i64: 1, 256>}, {pipeline_mode = #tpu.pipeline_mode<synchronous>, transform_indices = @transform_8, window_bounds = array<i64: 128, 128>}, {pipeline_mode = #tpu.pipeline_mode<synchronous>, transform_indices = @transform_9, window_bounds = array<i64: 1, 128>}, {transform_indices = @transform_10, window_bounds = array<i64: 1, 64, 128>}]} {
    %c0_i32 = arith.constant 0 : i32
    %0 = arith.cmpi eq, %arg2, %c0_i32 : i32
    %1 = arith.extui %0 : i1 to i32
    %c0_i32_0 = arith.constant 0 : i32
    %2 = arith.cmpi ne, %1, %c0_i32_0 : i32
    scf.if %2 {
      %c0_35 = arith.constant 0 : index
      %c0_36 = arith.constant 0 : index
      %c0_37 = arith.constant 0 : index
      %52 = vector.load %arg3[%c0_35, %c0_36, %c0_37] : memref<1x64x128xf32, #tpu.memory_space<vmem>>, vector<1x64x128xf32>
      %53 = vector.shape_cast %52 : vector<1x64x128xf32> to vector<64x128xf32>
      %c0_38 = arith.constant 0 : index
      %c0_39 = arith.constant 0 : index
      %c0_40 = arith.constant 0 : index
      %54 = vector.load %arg5[%c0_38, %c0_39, %c0_40] : memref<1x1x128xf32, #tpu.memory_space<vmem>>, vector<1x1x128xf32>
      %55 = vector.shape_cast %54 : vector<1x1x128xf32> to vector<1x128xf32>
      %56 = vector.broadcast %55 : vector<1x128xf32> to vector<64x128xf32>
      %57 = arith.mulf %53, %56 : vector<64x128xf32>
      %c0_41 = arith.constant 0 : index
      %c0_42 = arith.constant 0 : index
      %c0_43 = arith.constant 0 : index
      %58 = vector.load %arg6[%c0_41, %c0_42, %c0_43] : memref<1x1x128xf32, #tpu.memory_space<vmem>>, vector<1x1x128xf32>
      %59 = vector.shape_cast %58 : vector<1x1x128xf32> to vector<1x128xf32>
      %60 = vector.broadcast %59 : vector<1x128xf32> to vector<64x128xf32>
      %61 = arith.addf %57, %60 : vector<64x128xf32>
      %62 = arith.truncf %61 : vector<64x128xf32> to vector<64x128xbf16>
      %c0_44 = arith.constant 0 : index
      %c0_45 = arith.constant 0 : index
      %63 = vector.load %arg7[%c0_44, %c0_45] : memref<128x128xbf16, #tpu.memory_space<vmem>>, vector<128x128xbf16>
      %cst_46 = arith.constant dense<0.000000e+00> : vector<64x128xf32>
      %64 = tpu.matmul %62, %63, %cst_46 {dimension_numbers = #tpu.dot_dimension_numbers<[1], [0], [0], [1], [0, 0, 1, 1], [], []>} : vector<64x128xbf16>, vector<128x128xbf16>, vector<64x128xf32> -> vector<64x128xf32>
      %c0_47 = arith.constant 0 : index
      %c0_48 = arith.constant 0 : index
      %65 = vector.load %arg8[%c0_47, %c0_48] : memref<1x128xf32, #tpu.memory_space<vmem>>, vector<1x128xf32>
      %66 = vector.broadcast %65 : vector<1x128xf32> to vector<64x128xf32>
      %67 = arith.addf %64, %66 : vector<64x128xf32>
      %68 = arith.truncf %67 : vector<64x128xf32> to vector<64x128xbf16>
      %c0_49 = arith.constant 0 : index
      %c0_50 = arith.constant 0 : index
      %69 = vector.load %arg14[%c0_49, %c0_50] : memref<64x128xbf16, #tpu.memory_space<vmem>>, vector<64x128xbf16>
      tpu.vector_store %arg14[%c0_49, %c0_50], %68 {strides = array<i32>} : memref<64x128xbf16, #tpu.memory_space<vmem>>, vector<64x128xbf16>,
      %cst_51 = arith.constant 0xFF800000 : f32
      %70 = vector.broadcast %cst_51 : f32 to vector<64x1xf32>
      %c0_52 = arith.constant 0 : index
      %c0_53 = arith.constant 0 : index
      %71 = vector.load %arg15[%c0_52, %c0_53] : memref<64x1xf32, #tpu.memory_space<vmem>>, vector<64x1xf32>
      tpu.vector_store %arg15[%c0_52, %c0_53], %70 {strides = array<i32>} : memref<64x1xf32, #tpu.memory_space<vmem>>, vector<64x1xf32>,
      %cst_54 = arith.constant 0.000000e+00 : f32
      %72 = vector.broadcast %cst_54 : f32 to vector<64x1xf32>
      %c0_55 = arith.constant 0 : index
      %c0_56 = arith.constant 0 : index
      %73 = vector.load %arg16[%c0_55, %c0_56] : memref<64x1xf32, #tpu.memory_space<vmem>>, vector<64x1xf32>
      tpu.vector_store %arg16[%c0_55, %c0_56], %72 {strides = array<i32>} : memref<64x1xf32, #tpu.memory_space<vmem>>, vector<64x1xf32>,
      %cst_57 = arith.constant 0.000000e+00 : f32
      %74 = vector.broadcast %cst_57 : f32 to vector<64x128xf32>
      %c0_58 = arith.constant 0 : index
      %c0_59 = arith.constant 0 : index
      %75 = vector.load %arg17[%c0_58, %c0_59] : memref<64x128xf32, #tpu.memory_space<vmem>>, vector<64x128xf32>
      tpu.vector_store %arg17[%c0_58, %c0_59], %74 {strides = array<i32>} : memref<64x128xf32, #tpu.memory_space<vmem>>, vector<64x128xf32>,
    } else {
    }
    %c0 = arith.constant 0 : index
    %c0_1 = arith.constant 0 : index
    %c0_2 = arith.constant 0 : index
    %3 = vector.load %arg4[%c0, %c0_1, %c0_2] : memref<1x64x128xf32, #tpu.memory_space<vmem>>, vector<1x64x128xf32>
    %4 = vector.shape_cast %3 : vector<1x64x128xf32> to vector<64x128xf32>
    %c0_3 = arith.constant 0 : index
    %c0_4 = arith.constant 0 : index
    %c0_5 = arith.constant 0 : index
    %5 = vector.load %arg5[%c0_3, %c0_4, %c0_5] : memref<1x1x128xf32, #tpu.memory_space<vmem>>, vector<1x1x128xf32>
    %6 = vector.shape_cast %5 : vector<1x1x128xf32> to vector<1x128xf32>
    %7 = vector.broadcast %6 : vector<1x128xf32> to vector<64x128xf32>
    %8 = arith.mulf %4, %7 : vector<64x128xf32>
    %c0_6 = arith.constant 0 : index
    %c0_7 = arith.constant 0 : index
    %c0_8 = arith.constant 0 : index
    %9 = vector.load %arg6[%c0_6, %c0_7, %c0_8] : memref<1x1x128xf32, #tpu.memory_space<vmem>>, vector<1x1x128xf32>
    %10 = vector.shape_cast %9 : vector<1x1x128xf32> to vector<1x128xf32>
    %11 = vector.broadcast %10 : vector<1x128xf32> to vector<64x128xf32>
    %12 = arith.addf %8, %11 : vector<64x128xf32>
    %13 = arith.truncf %12 : vector<64x128xf32> to vector<64x128xbf16>
    %c0_9 = arith.constant 0 : index
    %c0_10 = arith.constant 0 : index
    %14 = vector.load %arg9[%c0_9, %c0_10] : memref<128x256xbf16, #tpu.memory_space<vmem>>, vector<128x256xbf16>
    %cst = arith.constant dense<0.000000e+00> : vector<64x256xf32>
    %15 = tpu.matmul %13, %14, %cst {dimension_numbers = #tpu.dot_dimension_numbers<[1], [0], [0], [1], [0, 0, 1, 1], [], []>} : vector<64x128xbf16>, vector<128x256xbf16>, vector<64x256xf32> -> vector<64x256xf32>
    %c0_11 = arith.constant 0 : index
    %c0_12 = arith.constant 0 : index
    %16 = vector.load %arg10[%c0_11, %c0_12] : memref<1x256xf32, #tpu.memory_space<vmem>>, vector<1x256xf32>
    %17 = vector.broadcast %16 : vector<1x256xf32> to vector<64x256xf32>
    %18 = arith.addf %15, %17 : vector<64x256xf32>
    %19 = vector.extract_strided_slice %18 {offsets = [0, 0], sizes = [64, 128], strides = [1, 1]} : vector<64x256xf32> to vector<64x128xf32>
    %20 = arith.truncf %19 : vector<64x128xf32> to vector<64x128xbf16>
    %21 = vector.extract_strided_slice %18 {offsets = [0, 128], sizes = [64, 128], strides = [1, 1]} : vector<64x256xf32> to vector<64x128xf32>
    %22 = arith.truncf %21 : vector<64x128xf32> to vector<64x128xbf16>
    %c0_13 = arith.constant 0 : index
    %c0_14 = arith.constant 0 : index
    %23 = vector.load %arg14[%c0_13, %c0_14] : memref<64x128xbf16, #tpu.memory_space<vmem>>, vector<64x128xbf16>
    %cst_15 = arith.constant dense<0.000000e+00> : vector<64x64xf32>
    %24 = tpu.matmul %23, %20, %cst_15 {dimension_numbers = #tpu.dot_dimension_numbers<[1], [1], [0], [0], [0, 0, 1, 0], [], []>} : vector<64x128xbf16>, vector<64x128xbf16>, vector<64x64xf32> -> vector<64x64xf32>
    %cst_16 = arith.constant dense<0xFF800000> : vector<64xf32>
    %25 = vector.multi_reduction <maximumf>, %24, %cst_16 [1] : vector<64x64xf32> to vector<64xf32>
    %26 = vector.shape_cast %25 : vector<64xf32> to vector<64x1xf32>
    %c0_17 = arith.constant 0 : index
    %c0_18 = arith.constant 0 : index
    %27 = vector.load %arg15[%c0_17, %c0_18] : memref<64x1xf32, #tpu.memory_space<vmem>>, vector<64x1xf32>
    %28 = arith.maximumf %27, %26 : vector<64x1xf32>
    %c0_19 = arith.constant 0 : index
    %c0_20 = arith.constant 0 : index
    %29 = vector.load %arg15[%c0_19, %c0_20] : memref<64x1xf32, #tpu.memory_space<vmem>>, vector<64x1xf32>
    %30 = arith.subf %29, %28 : vector<64x1xf32>
    %31 = math.exp %30 : vector<64x1xf32>
    %32 = vector.broadcast %28 : vector<64x1xf32> to vector<64x64xf32>
    %33 = arith.subf %24, %32 : vector<64x64xf32>
    %34 = math.exp %33 : vector<64x64xf32>
    %c0_21 = arith.constant 0 : index
    %c0_22 = arith.constant 0 : index
    %35 = vector.load %arg16[%c0_21, %c0_22] : memref<64x1xf32, #tpu.memory_space<vmem>>, vector<64x1xf32>
    %36 = arith.mulf %31, %35 : vector<64x1xf32>
    %cst_23 = arith.constant dense<0.000000e+00> : vector<64xf32>
    %37 = vector.multi_reduction <add>, %34, %cst_23 [1] : vector<64x64xf32> to vector<64xf32>
    %38 = vector.shape_cast %37 : vector<64xf32> to vector<64x1xf32>
    %39 = arith.addf %36, %38 : vector<64x1xf32>
    %c0_24 = arith.constant 0 : index
    %c0_25 = arith.constant 0 : index
    %40 = vector.load %arg16[%c0_24, %c0_25] : memref<64x1xf32, #tpu.memory_space<vmem>>, vector<64x1xf32>
    tpu.vector_store %arg16[%c0_24, %c0_25], %39 {strides = array<i32>} : memref<64x1xf32, #tpu.memory_space<vmem>>, vector<64x1xf32>,
    %c0_26 = arith.constant 0 : index
    %c0_27 = arith.constant 0 : index
    %41 = vector.load %arg17[%c0_26, %c0_27] : memref<64x128xf32, #tpu.memory_space<vmem>>, vector<64x128xf32>
    %42 = vector.broadcast %31 : vector<64x1xf32> to vector<64x128xf32>
    %43 = arith.mulf %42, %41 : vector<64x128xf32>
    %44 = arith.truncf %34 : vector<64x64xf32> to vector<64x64xbf16>
    %cst_28 = arith.constant dense<0.000000e+00> : vector<64x128xf32>
    %45 = tpu.matmul %44, %22, %cst_28 {dimension_numbers = #tpu.dot_dimension_numbers<[1], [0], [0], [1], [0, 0, 1, 1], [], []>} : vector<64x64xbf16>, vector<64x128xbf16>, vector<64x128xf32> -> vector<64x128xf32>
    %46 = arith.addf %43, %45 : vector<64x128xf32>
    %c0_29 = arith.constant 0 : index
    %c0_30 = arith.constant 0 : index
    %47 = vector.load %arg17[%c0_29, %c0_30] : memref<64x128xf32, #tpu.memory_space<vmem>>, vector<64x128xf32>
    tpu.vector_store %arg17[%c0_29, %c0_30], %46 {strides = array<i32>} : memref<64x128xf32, #tpu.memory_space<vmem>>, vector<64x128xf32>,
    %c0_31 = arith.constant 0 : index
    %c0_32 = arith.constant 0 : index
    %48 = vector.load %arg15[%c0_31, %c0_32] : memref<64x1xf32, #tpu.memory_space<vmem>>, vector<64x1xf32>
    tpu.vector_store %arg15[%c0_31, %c0_32], %28 {strides = array<i32>} : memref<64x1xf32, #tpu.memory_space<vmem>>, vector<64x1xf32>,
    %c0_i32_33 = arith.constant 0 : i32
    %49 = arith.cmpi eq, %arg2, %c0_i32_33 : i32
    %50 = arith.extui %49 : i1 to i32
    %c0_i32_34 = arith.constant 0 : i32
    %51 = arith.cmpi ne, %50, %c0_i32_34 : i32
    scf.if %51 {
      %c0_35 = arith.constant 0 : index
      %c0_36 = arith.constant 0 : index
      %52 = vector.load %arg17[%c0_35, %c0_36] : memref<64x128xf32, #tpu.memory_space<vmem>>, vector<64x128xf32>
      %c0_37 = arith.constant 0 : index
      %c0_38 = arith.constant 0 : index
      %53 = vector.load %arg16[%c0_37, %c0_38] : memref<64x1xf32, #tpu.memory_space<vmem>>, vector<64x1xf32>
      %54 = vector.broadcast %53 : vector<64x1xf32> to vector<64x128xf32>
      %55 = arith.divf %52, %54 : vector<64x128xf32>
      %56 = arith.truncf %55 : vector<64x128xf32> to vector<64x128xbf16>
      %c0_39 = arith.constant 0 : index
      %c0_40 = arith.constant 0 : index
      %57 = vector.load %arg11[%c0_39, %c0_40] : memref<128x128xbf16, #tpu.memory_space<vmem>>, vector<128x128xbf16>
      %cst_41 = arith.constant dense<0.000000e+00> : vector<64x128xf32>
      %58 = tpu.matmul %56, %57, %cst_41 {dimension_numbers = #tpu.dot_dimension_numbers<[1], [0], [0], [1], [0, 0, 1, 1], [], []>} : vector<64x128xbf16>, vector<128x128xbf16>, vector<64x128xf32> -> vector<64x128xf32>
      %c0_42 = arith.constant 0 : index
      %c0_43 = arith.constant 0 : index
      %59 = vector.load %arg12[%c0_42, %c0_43] : memref<1x128xf32, #tpu.memory_space<vmem>>, vector<1x128xf32>
      %60 = vector.broadcast %59 : vector<1x128xf32> to vector<64x128xf32>
      %61 = arith.addf %58, %60 : vector<64x128xf32>
      %c0_44 = arith.constant 0 : index
      %c0_45 = arith.constant 0 : index
      %c0_46 = arith.constant 0 : index
      %62 = vector.load %arg3[%c0_44, %c0_45, %c0_46] : memref<1x64x128xf32, #tpu.memory_space<vmem>>, vector<1x64x128xf32>
      %63 = vector.shape_cast %62 : vector<1x64x128xf32> to vector<64x128xf32>
      %64 = arith.addf %63, %61 : vector<64x128xf32>
      %c0_47 = arith.constant 0 : index
      %c0_48 = arith.constant 0 : index
      %c0_49 = arith.constant 0 : index
      %65 = vector.load %arg13[%c0_47, %c0_48, %c0_49] : memref<1x64x128xf32, #tpu.memory_space<vmem>>, vector<1x64x128xf32>
      %66 = vector.shape_cast %65 : vector<1x64x128xf32> to vector<64x128xf32>
      %67 = vector.shape_cast %64 : vector<64x128xf32> to vector<1x64x128xf32>
      tpu.vector_store %arg13[%c0_47, %c0_48, %c0_49], %67 {strides = array<i32>} : memref<1x64x128xf32, #tpu.memory_space<vmem>>, vector<1x64x128xf32>,
    } else {
    }
    return
  }
  func.func @transform_0(%arg0: i32, %arg1: i32, %arg2: i32) -> (i32, i32, i32) {
    %c0_i32 = arith.constant 0 : i32
    %c0_i32_0 = arith.constant 0 : i32
    return %arg0, %arg1, %c0_i32 : i32, i32, i32
  }
  func.func @transform_1(%arg0: i32, %arg1: i32, %arg2: i32) -> (i32, i32, i32) {
    %c0_i32 = arith.constant 0 : i32
    %c0_i32_0 = arith.constant 0 : i32
    return %arg0, %arg2, %c0_i32 : i32, i32, i32
  }
  func.func @transform_2(%arg0: i32, %arg1: i32, %arg2: i32) -> (i32, i32, i32) {
    %c0_i32 = arith.constant 0 : i32
    %c0_i32_0 = arith.constant 0 : i32
    %c0_i32_1 = arith.constant 0 : i32
    return %arg0, %c0_i32, %c0_i32_0 : i32, i32, i32
  }
  func.func @transform_3(%arg0: i32, %arg1: i32, %arg2: i32) -> (i32, i32, i32) {
    %c0_i32 = arith.constant 0 : i32
    %c0_i32_0 = arith.constant 0 : i32
    %c0_i32_1 = arith.constant 0 : i32
    return %arg0, %c0_i32, %c0_i32_0 : i32, i32, i32
  }
  func.func @transform_4(%arg0: i32, %arg1: i32, %arg2: i32) -> (i32, i32) {
    %c0_i32 = arith.constant 0 : i32
    %c0_i32_0 = arith.constant 0 : i32
    %c0_i32_1 = arith.constant 0 : i32
    return %c0_i32, %c0_i32_0 : i32, i32
  }
  func.func @transform_5(%arg0: i32, %arg1: i32, %arg2: i32) -> (i32, i32) {
    %c0_i32 = arith.constant 0 : i32
    %c0_i32_0 = arith.constant 0 : i32
    %c0_i32_1 = arith.constant 0 : i32
    return %c0_i32, %c0_i32_0 : i32, i32
  }
  func.func @transform_6(%arg0: i32, %arg1: i32, %arg2: i32) -> (i32, i32) {
    %c0_i32 = arith.constant 0 : i32
    %c0_i32_0 = arith.constant 0 : i32
    %c0_i32_1 = arith.constant 0 : i32
    return %c0_i32, %c0_i32_0 : i32, i32
  }
  func.func @transform_7(%arg0: i32, %arg1: i32, %arg2: i32) -> (i32, i32) {
    %c0_i32 = arith.constant 0 : i32
    %c0_i32_0 = arith.constant 0 : i32
    %c0_i32_1 = arith.constant 0 : i32
    return %c0_i32, %c0_i32_0 : i32, i32
  }
  func.func @transform_8(%arg0: i32, %arg1: i32, %arg2: i32) -> (i32, i32) {
    %c0_i32 = arith.constant 0 : i32
    %c0_i32_0 = arith.constant 0 : i32
    %c0_i32_1 = arith.constant 0 : i32
    return %c0_i32, %c0_i32_0 : i32, i32
  }
  func.func @transform_9(%arg0: i32, %arg1: i32, %arg2: i32) -> (i32, i32) {
    %c0_i32 = arith.constant 0 : i32
    %c0_i32_0 = arith.constant 0 : i32
    %c0_i32_1 = arith.constant 0 : i32
    return %c0_i32, %c0_i32_0 : i32, i32
  }
  func.func @transform_10(%arg0: i32, %arg1: i32, %arg2: i32) -> (i32, i32, i32) {
    %c0_i32 = arith.constant 0 : i32
    %c0_i32_0 = arith.constant 0 : i32
    return %arg0, %arg1, %c0_i32 : i32, i32, i32
  }
}

</mosaic_0001>

<bundles_post_ra>
// kernel: tpu_custom_call.1
= control target key start
LH: loop header
LB: loop body
LE: loop exit
PB: predicated region body
PF: predicated region fallthrough
CT: control target
= control target key end

     0   :  { %s3144_s0 = inlined_call_operand.hbm [shape: f32[2,64,128], index: 0, kind: input, shape index: {}]   ;;  %s3145_s1 = inlined_call_operand.hbm [shape: f32[2,64,128], index: 1, kind: input, shape index: {}]   ;;  %s3146_s2 = inlined_call_operand.vmem [shape: f32[2,1,128], index: 2, kind: input, shape index: {}]   ;;  %s3147_s3 = inlined_call_operand.vmem [shape: f32[2,1,128], index: 3, kind: input, shape index: {}]   ;;  %s3148_s4 = inlined_call_operand.hbm [shape: bf16[128,128], index: 4, kind: input, shape index: {}]   ;;  %s3149_s5 = inlined_call_operand.vmem [shape: f32[1,128], index: 5, kind: input, shape index: {}]   ;;  %s3150_s6 = inlined_call_operand.hbm [shape: bf16[128,256], index: 6, kind: input, shape index: {}]   ;;  %s3151_s7 = inlined_call_operand.vmem [shape: f32[1,256], index: 7, kind: input, shape index: {}]   ;;  %s3152_s8 = inlined_call_operand.hbm [shape: bf16[128,128], index: 8, kind: input, shape index: {}]   ;;  %s3153_s9 = inlined_call_operand.vmem [shape: f32[1,128], index: 9, kind: input, shape index: {}]   ;;  %s3154_s10 = inlined_call_operand.hbm [shape: f32[2,64,128], index: 10, kind: output, shape index: {}]  }
   0x1   :  { %3167 = sst [smem:[#allocation23_spill]] %s3144_s0 }
   0x2   :  { %3168 = sst [smem:[#allocation24_spill]] %s3148_s4 }
   0x3   :  { %3169 = sst [smem:[#allocation25_spill]] %s3149_s5 }
   0x4   :  { %3170 = sst [smem:[#allocation26_spill]] %s3150_s6 }
   0x5   :  { %3171 = sst [smem:[#allocation27_spill]] %s3152_s8 }
   0x6   :  { %3172 = sst [smem:[#allocation28_spill]] %s3153_s9 }
   0x7   :  { %3173 = sst [smem:[#allocation29_spill]] %s3154_s10 }
   0x8   :  { %15 = vsyncpa [#allocation7], 0 }
   0x9   :  { %17 = vsyncpa [#allocation7 + $0x1], 0 }
   0xa   :  { %18 = vsyncpa [#allocation10], 0 }
   0xb   :  { %20 = vsyncpa [#allocation10 + $0x1], 0 }
   0xc   :  { %21 = vsyncpa [#allocation13], 0 }
   0xd   :  { %22 = vsyncpa [#allocation8], 0 }
   0xe   :  { %24 = vsyncpa [#allocation8 + $0x1], 0  ;;  %s2502_s13 = smov 0   ;;  %s2504_s14 = smov 0  }
   0xf   :  { %s2506_s15 = smov 0   ;;  %s2508_s16 = smov 0  }
  0x10   :  { %s2510_s17 = smov 0   ;;  %s2512_s18 = smov 0  }
  0x11 LB: > { %3174 = sst [smem:[#allocation21_spill]] %s2410_s13  ;;  %s2533_s19 = sadd.s32 4294967295, %s2430_s18   ;;  %s2430_s18 = sphi %s2512_s18, %s30_s18   ;;  %s2426_s17 = sphi %s2510_s17, %s3211_s17   ;;  %s2422_s16 = sphi %s2508_s16, %s3210_s16   ;;  %s2418_s15 = sphi %s2506_s15, %s3209_s15   ;;  %s2414_s14 = sphi %s2504_s14, %s3208_s14   ;;  %s2410_s13 = sphi %s2502_s13, %s3207_s13  }
  0x12   : > { %s1802_s20 = sadd.s32 4294967294, %s2430_s18   ;;  %p71_p0 = scmp.ne.s32.totalorder %s2414_s14, %s2410_s13 }
  0x13   : > { %p3156_p1 = scmp.eq.s32.totalorder %s2533_s19, 0  ;;  %p309_p3 = scmp.eq.s32.totalorder %s1802_s20, 1 }
  0x14   : > { %p1803_p5 = scmp.ge.s32.totalorder %s2430_s18, 1  ;;  %p316_p7 = scmp.lt.s32.totalorder %s2430_s18, 3 }
  0x15   : > { %p2542_p4 = por %p3156_p1, %p71_p0  ;;  %p2547_p6 = por %p309_p3, %p71_p0 }
  0x16   : > { %p2552_p8 = pnand %p1803_p5, %p316_p7  ;;  %s2432_s24 = smov [#allocation11]  }
  0x17   : > { %s3175_s21 = scalar_select %p2542_p4, 1, 0 }
  0x18   : > { %s3176_s22 = scalar_select %p2547_p6, 1, 0 }
  0x19   : > { %s3178_s23 = scalar_select %p2552_p8, 1, 0 }
  0x1a   : > { %3177 = sst [smem:[#allocation22_spill]] %s3176_s22  ;;  %s328_s25 = sshll.u32 %s2432_s24, 4  ;;  %s2556_s25 = int_to_ptr.vmem [resolvable:$true] %s328_s25 }
  0x1b   : > { %p2009_p9 = pneg %p2552_p8  ;;  %s2433_s27 = smov [#allocation12]  }
  0x1c   : > { %s344_s28 = sshll.u32 %s2433_s27, 4  ;;  %s3180_s4 = sld [smem:[#allocation24_spill]]  ;;  %s2567_s28 = int_to_ptr.vmem [resolvable:$true] %s344_s28 }
  0x1d   : > { %p2563_p11 = pnand %p2009_p9, %p3156_p1 }
  0x1f   : > { %p2577_p13 = pneg %p2563_p11 }
  0x22   : > { %s2192_s11 = scalar_lea.hbm %s3180_s4, 1024 }
  0x23   : > { %p2193_p12 = scmp.ne.s32.totalorder %s3180_s4, %s2192_s11  ;;  %p2199_p5 = scmp.lt.u32.totalorder %s2192_s11, %s3180_s4 }
  0x25   : > { %p2195_p0 = pnand %p2577_p13, %p2193_p12 }
  0x27   : > { %p2196_p3 = pneg %p2195_p0 }
  0x29   : > { %p2201_p7 = pnand %p2199_p5, %p2196_p3 }
  0x2b   : > { %2204 = shalt.err (!%p2201_p7)
}
  0x2c   : > { %s2205_s29 = scalar_lea.vmem %s2556_s25, 1024  ;;  %p2213_p2 = scmp.lt.s32.totalorder %s2556_s25, %s2556_s25 }
  0x2d   : > { %p2206_p9 = scmp.ne.s32.totalorder %s2556_s25, %s2205_s29  ;;  %p2214_p6 = scmp.lt.s32.totalorder %s2205_s29, %s2205_s29 }
  0x2f   : > { %p2208_p10 = pnand %p2206_p9, %p2577_p13  ;;  %p2215_p12 = por %p2214_p6, %p2213_p2 }
  0x31   : > { %p2209_p1 = pneg %p2208_p10 }
  0x33   : > { %p2216_p0 = pnand %p2215_p12, %p2209_p1 }
  0x35   : > { %2219 = shalt.err (!%p2216_p0)
}
  0x36   : > { %s3159_s30 = smov 64   ;;  %s3160_s22 = smov 4  }
  0x37   : > { %2012 = dma.hbm_to_vmem [thread:$0]  (!%p2563_p11), %s3180_s4, 1024, %s2556_s25, [#allocation10], %s3159_s30, %s3159_s30, %s3160_s22  }
  0x38   : > { %s3182_s6 = sld [smem:[#allocation26_spill]] }
  0x3e   : > { %s2220_s29 = scalar_lea.hbm %s3182_s6, 2048 }
  0x3f   : > { %p2221_p1 = scmp.ne.s32.totalorder %s3182_s6, %s2220_s29  ;;  %p2227_p10 = scmp.lt.u32.totalorder %s2220_s29, %s3182_s6 }
  0x41   : > { %p2223_p2 = pnand %p2221_p1, %p2577_p13 }
  0x43   : > { %p2224_p6 = pneg %p2223_p2 }
  0x45   : > { %p2229_p3 = pnand %p2227_p10, %p2224_p6 }
  0x47   : > { %2232 = shalt.err (!%p2229_p3)
}
  0x48   : > { %s2233_s25 = scalar_lea.vmem %s2567_s28, 2048  ;;  %p2241_p12 = scmp.lt.s32.totalorder %s2567_s28, %s2567_s28 }
  0x49   : > { %p2234_p5 = scmp.ne.s32.totalorder %s2567_s28, %s2233_s25  ;;  %p2242_p0 = scmp.lt.s32.totalorder %s2233_s25, %s2233_s25 }
  0x4b   : > { %p2236_p7 = pnand %p2234_p5, %p2577_p13  ;;  %p2243_p1 = por %p2242_p0, %p2241_p12 }
  0x4d   : > { %p2237_p9 = pneg %p2236_p7 }
  0x4f   : > { %p2244_p2 = pnand %p2243_p1, %p2237_p9 }
  0x51   : > { %2247 = shalt.err (!%p2244_p2)
}
  0x52   : > { %s3163_s10 = smov 128   ;;  %s3165_s5 = smov 8  }
  0x53   : > { %2015 = dma.hbm_to_vmem [thread:$0]  (!%p2563_p11), %s3182_s6, 2048, %s2567_s28, [#allocation13], %s3163_s10, %s3163_s10, %s3165_s5  }
  0x54   : > { %s2438_s11 = smov [#allocation14]   ;;  %s3183_s8 = sld [smem:[#allocation27_spill]] }
  0x55   : > { %s360_s12 = sshll.u32 %s2438_s11, 4  ;;  %s361_s12 = int_to_ptr.vmem [resolvable:$true] %s360_s12 }
  0x5a   : > { %s2248_s29 = scalar_lea.hbm %s3183_s8, 1024 }
  0x5b   : > { %p2249_p6 = scmp.ne.s32.totalorder %s3183_s8, %s2248_s29  ;;  %p2255_p5 = scmp.lt.u32.totalorder %s2248_s29, %s3183_s8 }
  0x5d   : > { %p2251_p10 = pnand %p2249_p6, %p2577_p13 }
  0x5f   : > { %p2252_p3 = pneg %p2251_p10 }
  0x61   : > { %p2257_p7 = pnand %p2255_p5, %p2252_p3 }
  0x63   : > { %2260 = shalt.err (!%p2257_p7)
}
  0x64   : > { %s2261_s28 = scalar_lea.vmem %s361_s12, 1024  ;;  %p2269_p1 = scmp.lt.s32.totalorder %s361_s12, %s361_s12 }
  0x65   : > { %p2262_p9 = scmp.ne.s32.totalorder %s361_s12, %s2261_s28  ;;  %p2270_p2 = scmp.lt.s32.totalorder %s2261_s28, %s2261_s28 }
  0x67   : > { %p2264_p12 = pnand %p2262_p9, %p2577_p13  ;;  %p2271_p4 = por %p2270_p2, %p2269_p1 }
  0x69   : > { %p2265_p0 = pneg %p2264_p12 }
  0x6b   : > { %p2272_p8 = pnand %p2271_p4, %p2265_p0 }
  0x6d   : > { %2275 = shalt.err (!%p2272_p8)
}
  0x6e   : > { %s3184_s30 = smov 4   ;;  %s3185_s9 = smov 64  }
  0x6f   : > { %2018 = dma.hbm_to_vmem [thread:$0]  (!%p2563_p11), %s3183_s8, 1024, %s361_s12, [#allocation13], %s3185_s9, %s3185_s9, %s3184_s30  }
  0x70   : > { %s49_s24 = sadd.s32 1, %s2426_s17  ;;  %s58_s26 = sadd.s32 1, %s2418_s15 }
  0x71   : > { %p51_p4 = scmp.ge.s32.totalorder %s49_s24, 2  ;;  %p65_p8 = scmp.ne.s32.totalorder %s2418_s15, %s2414_s14 }
  0x72   : > { %p66_p13 = scmp.eq.s32.totalorder %s2430_s18, 0  ;;  %p3187_p10 = scmp.eq.s32.totalorder %s2533_s19, 1 }
  0x73   : > { %s3213_s24 = smov (%p51_p4, %s49_s24), 0  ;;  %p2033_p11 = scmp.lt.s32.totalorder %s2430_s18, 2 }
  0x74   : > { %p2655_p6 = por %p66_p13, %p65_p8  ;;  %p2661_p3 = por %p3187_p10, %p65_p8 }
  0x75   : > { %s53_s20 = ssub.s32 %s2426_s17, %s3213_s24  ;;  %s377_s12 = sand.u32 1, %s2418_s15  }
  0x76   : > { %p56_p5 = scmp.eq.s32.totalorder %s53_s20, 0  ;;  %s1808_s27 = sshll.u32 %s377_s12, 6 }
  0x77   : > { %s1868_s25 = sshll.u32 %s2426_s17, 10  ;;  %s3189_s0 = sld [smem:[#allocation23_spill]] }
  0x78   : > { %s2670_s29 = scalar_select %p56_p5, %s2418_s15, %s58_s26  }
  0x79   : > { %s381_s4 = scalar_lea.vmem [#allocation6], %s1808_s27  ;;  %p2682_p7 = pnand %p2033_p11, %p2655_p6 }
  0x7a   : > { %s390_s22 = sshll.u32 %s381_s4, 4  ;;  %s2689_s28 = scalar_lea.hbm %s3145_s1, %s1868_s25  ;;  %s2678_s22 = int_to_ptr.vmem [resolvable:$true] %s390_s22 }
  0x7b   : > { %s404_s30 = scalar_lea.vmem [#allocation9], %s1808_s27  ;;  %s2693_s6 = scalar_lea.sflag [#allocation7], %s377_s12 }
  0x7c   : > { %s2691_s5 = sshll.u32 %s404_s30, 4  ;;  %p2278_p12 = pneg %p2682_p7  ;;  %s2725_s5 = int_to_ptr.vmem [resolvable:$true] %s2691_s5 }
  0x7d   : > { %s2676_s9 = scalar_lea.hbm %s3189_s0, %s1868_s25  ;;  %s2281_s10 = scalar_lea.hbm %s3189_s0, 2048 }
  0x7e   : > { %s2276_s4 = scalar_lea.hbm %s2676_s9, 1024  ;;  %p2282_p2 = scmp.lt.u32.totalorder %s2676_s9, %s3189_s0 }
  0x7f   : > { %p2277_p9 = scmp.ne.s32.totalorder %s2676_s9, %s2276_s4  ;;  %p2283_p4 = scmp.lt.u32.totalorder %s2281_s10, %s2276_s4 }
  0x80   : > { %p2285_p13 = scmp.lt.u32.totalorder %s2276_s4, %s2676_s9 }
  0x81   : > { %p2279_p0 = pnand %p2278_p12, %p2277_p9  ;;  %p2284_p8 = por %p2283_p4, %p2282_p2 }
  0x83   : > { %p2280_p1 = pneg %p2279_p0  ;;  %p2286_p6 = por %p2285_p13, %p2284_p8 }
  0x85   : > { %p2287_p10 = pnand %p2286_p6, %p2280_p1 }
  0x87   : > { %2290 = shalt.err (!%p2287_p10)
}
  0x88   : > { %s2291_s12 = scalar_lea.vmem %s2678_s22, 1024  ;;  %s2439_s8 = smov [#allocation6]  }
  0x89   : > { %p2292_p11 = scmp.ne.s32.totalorder %s2678_s22, %s2291_s12  ;;  %s2296_s27 = sshll.u32 %s2439_s8, 4  ;;  %s2297_s27 = int_to_ptr.vmem [resolvable:$false] %s2296_s27 }
  0x8a   : > { %s2298_s30 = scalar_lea.vmem %s2297_s27, 2048  ;;  %p2299_p0 = scmp.lt.s32.totalorder %s2678_s22, %s2297_s27 }
  0x8b   : > { %p2294_p5 = pnand %p2292_p11, %p2278_p12  ;;  %p2300_p2 = scmp.lt.s32.totalorder %s2298_s30, %s2291_s12 }
  0x8d   : > { %p2295_p9 = pneg %p2294_p5  ;;  %p2301_p4 = por %p2300_p2, %p2299_p0 }
  0x8f   : > { %p2302_p8 = pnand %p2301_p4, %p2295_p9 }
  0x91   : > { %2305 = shalt.err (!%p2302_p8)
}
  0x92   : > { %s3191_s4 = smov 8   ;;  %s3192_s13 = smov 128  }
  0x93   : > { %2022 = dma.hbm_to_vmem [thread:$0]  (!%p2682_p7), %s2676_s9, 1024, %s2678_s22, %s2693_s6, %s3192_s13, %s3192_s13, %s3191_s4  }
  0x94   : > { %s400_s10 = sand.u32 1, %s2430_s18   ;;  %s2306_s25 = scalar_lea.hbm %s2689_s28, 1024 }
  0x95   : > { %s2728_s26 = scalar_lea.sflag [#allocation10], %s400_s10  ;;  %p2307_p1 = scmp.ne.s32.totalorder %s2689_s28, %s2306_s25 }
  0x96   : > { %s2311_s27 = scalar_lea.hbm %s3145_s1, 2048  ;;  %p2312_p10 = scmp.lt.u32.totalorder %s2689_s28, %s3145_s1 }
  0x97   : > { %p2309_p13 = pnand %p2307_p1, %p2278_p12  ;;  %p2313_p11 = scmp.lt.u32.totalorder %s2311_s27, %s2306_s25 }
  0x98   : > { %p2315_p9 = scmp.lt.u32.totalorder %s2306_s25, %s2689_s28 }
  0x99   : > { %p2310_p6 = pneg %p2309_p13  ;;  %p2314_p5 = por %p2313_p11, %p2312_p10 }
  0x9b   : > { %p2316_p0 = por %p2315_p9, %p2314_p5 }
  0x9d   : > { %p2317_p2 = pnand %p2316_p0, %p2310_p6 }
  0x9f   : > { %2320 = shalt.err (!%p2317_p2)
}
  0xa0   : > { %s2321_s6 = scalar_lea.vmem %s2725_s5, 1024  ;;  %s2440_s9 = smov [#allocation9]  }
  0xa1   : > { %p2322_p4 = scmp.ne.s32.totalorder %s2725_s5, %s2321_s6  ;;  %s2326_s22 = sshll.u32 %s2440_s9, 4  ;;  %s2327_s22 = int_to_ptr.vmem [resolvable:$false] %s2326_s22 }
  0xa2   : > { %s2328_s0 = scalar_lea.vmem %s2327_s22, 2048  ;;  %p2329_p13 = scmp.lt.s32.totalorder %s2725_s5, %s2327_s22 }
  0xa3   : > { %p2324_p8 = pnand %p2322_p4, %p2278_p12  ;;  %p2330_p10 = scmp.lt.s32.totalorder %s2328_s0, %s2321_s6 }
  0xa5   : > { %p2325_p1 = pneg %p2324_p8  ;;  %p2331_p11 = por %p2330_p10, %p2329_p13 }
  0xa7   : > { %p2332_p5 = pnand %p2331_p11, %p2325_p1 }
  0xa9   : > { %2335 = shalt.err (!%p2332_p5)
}
  0xaa   : > { %2025 = dma.hbm_to_vmem [thread:$0]  (!%p2682_p7), %s2689_s28, 1024, %s2725_s5, %s2728_s26, %s3192_s13, %s3192_s13, %s3191_s4  }
  0xab   : > { %p3193_p12 = scmp.ne.s32.totalorder %s3178_s23, 0 }
  0xac   : > { %s2760_s10 = sand.u32 (!%p3193_p12), 1, %s2414_s14   ;;  %p3194_p6 = scmp.ne.s32.totalorder (!%p3193_p12), %s3175_s21, 0 }
  0xad   : > { %437 = sbr.rel (%p3193_p12) target bundleno = 1534 (0x5fe), region = 60  ;;  %s2763_s25 = sshll.u32 (!%p3193_p12), %s2760_s10, 6 }
  0xae   : > { %s440_s20 = scalar_lea.sflag (!%p3193_p12), [#allocation7], %s2760_s10  ;;  %s2767_s12 = scalar_lea.vmem (!%p3193_p12), [#allocation6], %s2763_s25 }
  0xb4   : > { %2389 = dma.done.wait (%p3194_p6), %s440_s20, 1024  }
  0xb5   : > { %2391 = vsyncadd (%p3194_p6), %s440_s20, 4294966272  ;;  %s448_s23 = sand.u32 1, %s2533_s19   ;;  %s2775_s28 = scalar_lea.vmem [#allocation9], %s2763_s25 }
  0xb6   : > { %s449_s5 = scalar_lea.sflag [#allocation10], %s448_s23 }
  0xb7   : > { %2393 = dma.done.wait (%p3194_p6), %s449_s5, 1024  }
  0xb8   : > { %2395 = vsyncadd (%p3194_p6), %s449_s5, 4294966272  ;;  %p3195_p7 = scmp.eq.s32.totalorder %s2533_s19, 0 }
  0xba   : > { %2397 = dma.done.wait (%p3195_p7), [#allocation10], 1024   ;;  %p3196_p9 = pmov %p3195_p7 }
  0xbb   : > { %p3197_p0 = pmov %p3195_p7 }
  0xbc   : > { %2399 = vsyncadd (%p3196_p9), [#allocation10], 4294966272 }
  0xbd   : > { %2401 = dma.done.wait (%p3197_p0), [#allocation13], 3072   ;;  %p3198_p2 = pmov %p3197_p0 }
  0xbe   : > { %v2441_v0 = vmov 0   ;;  %v2100_v1 = vld [vmem:[#allocation12 + $0x4] ss:$8 sps:$4 sm:$0xff]   ;;  %v2102_v2 = vld [vmem:[#allocation12] ss:$8 sps:$4 sm:$0xff]   ;;  %p514_p4 = scmp.lt.s32.totalorder %s2422_s16, 1 }
  0xbf   : > { %2403 = vsyncadd (%p3198_p2), [#allocation13], 4294964224  ;;  %919 = vmatprep.mubr.bf16.mxu1 %v2441_v0  ;;  %2099 = vset.pattern.permute.xlu1 %v2441_v0  ;;  %v2103_v3 = vld [vmem:[#allocation12 + $0x14] ss:$8 sps:$4 sm:$0xff]   ;;  %v2105_v4 = vld [vmem:[#allocation12 + $0x10] ss:$8 sps:$4 sm:$0xff]  }
  0xc0   : > { %2098 = vset.pattern.permute.xlu0 %v2441_v0  ;;  %887 = vmatprep.subr.bf16.mxu1 %v2100_v1  ;;  %v2106_v5 = vld [vmem:[#allocation12 + $0x24] ss:$8 sps:$4 sm:$0xff]   ;;  %v2108_v6 = vld [vmem:[#allocation12 + $0x20] ss:$8 sps:$4 sm:$0xff]   ;;  %v2109_v7 = vld [vmem:[#allocation12 + $0x34] ss:$8 sps:$4 sm:$0xff]  }
  0xc1   : > { %888 = vmatpush1.bf16.msra.mxu1 %v2102_v2  ;;  %v2121_v8 = vld [vmem:[#allocation11] sm:$0xff]   ;;  %v2111_v9 = vld [vmem:[#allocation12 + $0x30] ss:$8 sps:$4 sm:$0xff]   ;;  %v2125_v11 = vld [vmem:[#allocation11 + $0x8] sm:$0xff]   ;;  %s2794_s19 = scalar_select %p514_p4, %s2422_s16, 1  ;;  %vm712_vm0 = vcmask 7168  }
  0xc2   : > { %889 = vmatprep.subr.bf16.mxu1 %v2103_v3  ;;  %v2112_v10 = vld [vmem:[#allocation12 + $0x44] ss:$8 sps:$4 sm:$0xff]   ;;  %1911 = vmatprep.subr.bf16.mxu0 %v2121_v8  ;;  %v2126_v12 = vld [vmem:[#allocation11 + $0x10] sm:$0xff]   ;;  %v2114_v13 = vld [vmem:[#allocation12 + $0x40] ss:$8 sps:$4 sm:$0xff]   ;;  %s3199_s0 = sld [smem:[#allocation25_spill]] }
  0xc3   : > { %1912 = vmatpush3.bf16.msra.mxu0 %v2121_v8  ;;  %v2115_v14 = vld [vmem:[#allocation12 + $0x54] ss:$8 sps:$4 sm:$0xff]   ;;  %s516_s13 = scalar_lea.vmem %s3146_s2, %s2794_s19  ;;  %v2117_v15 = vld [vmem:[#allocation12 + $0x50] ss:$8 sps:$4 sm:$0xff]   ;;  %v737_v16 = vld [vmem:[%s2775_s28] sm:$0xff]  ;;  %s519_s27 = scalar_lea.vmem %s3147_s3, %s2794_s19  ;;  %vm1037_vm1 = vcmask 523264  }
  0xc4   : > { %1913 = vmatprep.subr.bf16.mxu0 %v2125_v11  ;;  %v738_v17 = vld [vmem:[%s2775_s28 + $0x8] sm:$0xff]  ;;  %v2127_v18 = vld [vmem:[#allocation11 + $0x18] sm:$0xff]   ;;  %v2802_v19 = vld [vmem:[%s516_s13] ss:$0 sm:$0xff]  ;;  %s3200_s5 = sld [smem:[#allocation28_spill]]  ;;  %s1870_s21 = sshll.u32 %s2422_s16, 10 }
  0xc5   : > { %890 = vmatpush1.bf16.msra.mxu1 %v2105_v4  ;;  %v2118_v20 = vld [vmem:[#allocation12 + $0x64] ss:$8 sps:$4 sm:$0xff]   ;;  %v752_v21 = vmul.f32 %v2802_v19, %v737_v16  ;;  %v753_v22 = vmul.f32 %v2802_v19, %v738_v17  ;;  %v2120_v26 = vld [vmem:[#allocation12 + $0x60] ss:$8 sps:$4 sm:$0xff]   ;;  %v2122_v30 = vld [vmem:[#allocation12 + $0x74] ss:$8 sps:$4 sm:$0xff]  }
  0xc6   : > { %891 = vmatprep.subr.bf16.mxu1 %v2106_v5  ;;  %v2128_v23 = vld [vmem:[#allocation11 + $0x20] sm:$0xff]   ;;  %v527_v25 = vld [vmem:[%s2767_s12 + $0x8] sm:$0xff]  ;;  %v2124_v32 = vld [vmem:[#allocation12 + $0x70] ss:$8 sps:$4 sm:$0xff]   ;;  %s3201_s13 = sld [smem:[#allocation29_spill]]  ;;  %s1624_s8 = scalar_lea.sflag [#allocation8], %s2760_s10 }
  0xc7   : > { %1914 = vmatpush3.bf16.msra.mxu0 %v2125_v11  ;;  %v526_v24 = vld [vmem:[%s2767_s12] sm:$0xff]  ;;  %v542_v29 = vmul.f32 %v2802_v19, %v527_v25  ;;  %v2129_v31 = vld [vmem:[#allocation11 + $0x28] sm:$0xff]   ;;  %v739_v33 = vld [vmem:[%s2775_s28 + $0x10] sm:$0xff]  ;;  %s2444_s30 = smov [#allocation15]  }
  0xc8   : > { %1915 = vmatprep.subr.bf16.mxu0 %v2126_v12  ;;  %v2812_v27 = vld [vmem:[%s519_s27] ss:$0 sm:$0xff]  ;;  %v541_v28 = vmul.f32 %v2802_v19, %v526_v24  ;;  %v740_v34 = vld [vmem:[%s2775_s28 + $0x18] sm:$0xff]  ;;  %v2823_v40 = vld [vmem:[%s2767_s12 + $0x10] sm:$0xff]  ;;  %v754_v44 = vmul.f32 %v2802_v19, %v739_v33  ;;  %s2340_s6 = sshll.u32 %s2444_s30, 4  ;;  %s2341_s6 = int_to_ptr.vmem [resolvable:$false] %s2340_s6 }
  0xc9   : > { %892 = vmatpush1.bf16.msra.mxu1 %v2108_v6  ;;  %v557_v36 = vadd.f32 %v2812_v27, %v542_v29  ;;  %v767_v37 = vadd.f32 %v2812_v27, %v752_v21  ;;  %v768_v38 = vadd.f32 %v2812_v27, %v753_v22  ;;  %v529_v41 = vld [vmem:[%s2767_s12 + $0x18] sm:$0xff]  ;;  %v2130_v42 = vld [vmem:[#allocation11 + $0x30] sm:$0xff]   ;;  %v755_v45 = vmul.f32 %v2802_v19, %v740_v34  ;;  %v2829_v46 = vld [vmem:[%s2767_s12 + $0x20] sm:$0xff]  ;;  %s2342_s9 = scalar_lea.vmem %s2341_s6, 2048 }
  0xca   : > { %893 = vmatprep.subr.bf16.mxu1 %v2109_v7  ;;  %v556_v35 = vadd.f32 %v2812_v27, %v541_v28  ;;  %v531_v47 = vld [vmem:[%s2767_s12 + $0x28] sm:$0xff]  ;;  %v543_v48 = vmul.f32 %v2802_v19, %v2823_v40  ;;  %v544_v49 = vmul.f32 %v2802_v19, %v529_v41  ;;  %v545_v50 = vmul.f32 %v2802_v19, %v2829_v46  ;;  %v2131_v54 = vld [vmem:[#allocation11 + $0x38] sm:$0xff]   ;;  %v741_v55 = vld [vmem:[%s2775_s28 + $0x20] sm:$0xff] }
  0xcb   : > { %1916 = vmatpush3.bf16.msra.mxu0 %v2126_v12  ;;  %v775_v43 = vpack.c.bf16 %v768_v38, %v767_v37  ;;  %v546_v51 = vmul.f32 %v2802_v19, %v531_v47  ;;  %v769_v52 = vadd.f32 %v2812_v27, %v754_v44  ;;  %v770_v53 = vadd.f32 %v2812_v27, %v755_v45  ;;  %v742_v56 = vld [vmem:[%s2775_s28 + $0x28] sm:$0xff]  ;;  %v2848_v61 = vld [vmem:[%s2767_s12 + $0x30] sm:$0xff]  ;;  %v2851_v62 = vld [vmem:[%s2767_s12 + $0x38] sm:$0xff] }
  0xcc   : > { %1917 = vmatprep.subr.bf16.mxu0 %v2127_v18  ;;  %v564_v39 = vpack.c.bf16 %v557_v36, %v556_v35  ;;  %v558_v57 = vadd.f32 %v2812_v27, %v543_v48  ;;  %v559_v58 = vadd.f32 %v2812_v27, %v544_v49  ;;  %v560_v59 = vadd.f32 %v2812_v27, %v545_v50  ;;  %v795_v24 = vld [vmem:[%s3151_s7] sm:$0x3]  ;;  %s3202_s26 = smov %s3201_s13  ;;  %s3094_s16 = scalar_lea.hbm %s3201_s13, %s1870_s21 }
  0xcd   : > { %894 = vmatpush1.bf16.msra.mxu1 %v2111_v9  ;;  %v561_v60 = vadd.f32 %v2812_v27, %v546_v51  ;;  %v776_v63 = vpack.c.bf16 %v770_v53, %v769_v52  ;;  %v756_v1 = vmul.f32 %v2802_v19, %v741_v55  ;;  %v757_v2 = vmul.f32 %v2802_v19, %v742_v56  ;;  %v743_v9 = vld [vmem:[%s2775_s28 + $0x30] sm:$0xff]  ;;  %v1823_v37 = vld [vmem:[%s3199_s0] ss:$0 sm:$0xff] }
  0xce   : > { %895 = vmatprep.subr.bf16.mxu1 %v2112_v10  ;;  %1927 = vmatprep.mubr.bf16.mxu0 %v564_v39  ;;  %v565_v3 = vpack.c.bf16 %v559_v58, %v558_v57  ;;  %v547_v4 = vmul.f32 %v2802_v19, %v2848_v61  ;;  %v548_v5 = vmul.f32 %v2802_v19, %v2851_v62  ;;  %v744_v10 = vld [vmem:[%s2775_s28 + $0x38] sm:$0xff]  ;;  %v797_v21 = vlaneseq  ;;  %s511_s28 = scalar_lea.vmem [#allocation15], %s2763_s25 }
  0xcf   : > { %1918 = vmatpush3.bf16.msra.mxu0 %v2127_v18  ;;  %v566_v6 = vpack.c.bf16 %v561_v60, %v560_v59  ;;  %v771_v7 = vadd.f32 %v2812_v27, %v756_v1  ;;  %v772_v8 = vadd.f32 %v2812_v27, %v757_v2  ;;  %s1639_s19 = sshll.u32 %s511_s28, 4  ;;  %s3087_s19 = int_to_ptr.vmem [resolvable:$true] %s1639_s19 }
  0xd0   : > { %1919 = vmatprep.subr.bf16.mxu0 %v2128_v23  ;;  %v562_v11 = vadd.f32 %v2812_v27, %v547_v4  ;;  %v563_v12 = vadd.f32 %v2812_v27, %v548_v5  ;;  %v798_v22 = vshrl.u32 %v797_v21, 7  ;;  %s2336_s27 = scalar_lea.vmem %s3087_s19, 1024  ;;  %p2343_p10 = scmp.lt.s32.totalorder %s3087_s19, %s2341_s6 }
  0xd1   : > { %896 = vmatpush1.bf16.msra.mxu1 %v2114_v13  ;;  %v777_v13 = vpack.c.bf16 %v772_v8, %v771_v7  ;;  %p2337_p8 = scmp.ne.s32.totalorder %s3087_s19, %s2336_s27  ;;  %p2344_p11 = scmp.lt.s32.totalorder %s2342_s9, %s2336_s27 }
  0xd2   : > { %897 = vmatprep.subr.bf16.mxu1 %v2115_v14  ;;  %v758_v14 = vmul.f32 %v2802_v19, %v743_v9  ;;  %v567_v16 = vpack.c.bf16 %v563_v12, %v562_v11  ;;  %v803_v25 = vsub.s32 1, %v798_v22 }
  0xd3   : > { %1920 = vmatpush3.bf16.msra.mxu0 %v2128_v23  ;;  %v799_v23 = vsub.s32 0, %v798_v22  ;;  %p2338_p1 = pnand %p2337_p8, %p2661_p3  ;;  %p2345_p5 = por %p2344_p11, %p2343_p10 }
  0xd4   : > { %1921 = vmatprep.subr.bf16.mxu0 %v2129_v31  ;;  %v773_v17 = vadd.f32 %v2812_v27, %v758_v14  ;;  %v2876_v28 = vrot.slane %v795_v24, %v803_v25 }
  0xd5   : > { %898 = vmatpush1.bf16.msra.mxu1 %v2117_v15  ;;  %v759_v15 = vmul.f32 %v2802_v19, %v744_v10  ;;  %v2874_v19 = vrot.slane %v795_v24, %v799_v23  ;;  %p2339_p13 = pneg %p2338_p1 }
  0xd6   : > { %899 = vmatprep.subr.bf16.mxu1 %v2118_v20 }
  0xd7   : > { %1922 = vmatpush3.bf16.msra.mxu0 %v2129_v31  ;;  %v774_v18 = vadd.f32 %v2812_v27, %v759_v15  ;;  %p2346_p12 = pnand %p2345_p5, %p2339_p13 }
  0xd8   : > { %1923 = vmatprep.subr.bf16.mxu0 %v2130_v42 }
  0xd9   : > { %900 = vmatpush1.bf16.msra.mxu1 %v2120_v26  ;;  %v778_v20 = vpack.c.bf16 %v774_v18, %v773_v17 }
  0xda   : > { %901 = vmatprep.subr.bf16.mxu1 %v2122_v30 }
  0xdb   : > { %1924 = vmatpush3.bf16.msra.mxu0 %v2130_v42 }
  0xdc   : > { %1925 = vmatprep.subr.bf16.mxu0 %v2131_v54 }
  0xdd   : > { %902 = vmatpush1.bf16.msra.mxu1 %v2124_v32 }
  0xdf   : > { %1926 = vmatpush3.bf16.msra.mxu0 %v2131_v54 }
  0xe0   : > { %920 = vmatmul.mubr.bf16.vlgmr.msra.gmra.mrb[0].mxu1 %v775_v43 }
  0xe1   : > { %929 = vmatprep.mubr.bf16.mxu1 %v2441_v0 }
  0xe2   : > { %1928 = vmatmul.mubr.bf16.vlgmr.msra.gmra.mrb[0].mxu0 %v565_v3 }
  0xe3   : > { %1931 = vmatprep.mubr.bf16.mxu0 %v566_v6 }
  0xe8   : > { %930 = vmatmul.mubr.bf16.gmra.mrb[4].mxu1 %v776_v63 }
  0xe9   : > { %939 = vmatprep.mubr.bf16.mxu1 %v2441_v0 }
  0xea   : > { %1932 = vmatmul.mubr.bf16.gmra.mrb[4].mxu0 %v567_v16 }
  0xf0   : > { %940 = vmatmul.mubr.bf16.gmra.mrb[8].mxu1 %v777_v13 }
  0xf1   : > { %949 = vmatprep.mubr.bf16.mxu1 %v2441_v0 }
  0xf8   : > { %950 = vmatmul.mubr.bf16.gmra.mrb[12].mxu1 %v778_v20 }
 0x1b3   : > { %v921_v26 = vpop.f32.mrb[0].mxu1 }
 0x1b4   : > { %v923_v29 = vpop.f32.mrb[1].mxu1  ;;  %v922_v0 = vadd.f32 %v921_v26, %v2874_v19 }
 0x1b5   : > { %v925_v27 = vpop.f32.mrb[2].mxu1  ;;  %v924_v32 = vadd.f32 %v923_v29, %v2876_v28  ;;  %v1929_v41 = vpop.f32.mrb[0].mxu0 }
 0x1b6   : > { %v926_v30 = vadd.f32 %v925_v27, %v2874_v19  ;;  %v927_v31 = vpop.f32.mrb[3].mxu1  ;;  %v682_v45 = vadd.f32 %v1929_v41, %v1823_v37  ;;  %v673_v47 = vpop.f32.mrb[1].mxu0 }
 0x1b7   : > { %v928_v33 = vadd.f32 %v927_v31, %v2876_v28  ;;  %v674_v50 = vadd.f32 %v1823_v37, %v673_v47  ;;  %v1930_v51 = vpop.f32.mrb[2].mxu0 }
 0x1b8   : > { %v960_v34 = vpack.c.bf16 %v926_v30, %v922_v0  ;;  %v685_v53 = vadd.f32 %v1930_v51, %v1823_v37  ;;  %v676_v54 = vpop.f32.mrb[3].mxu0 }
 0x1b9   : > { %v964_v35 = vpack.c.bf16 %v928_v33, %v924_v32  ;;  %v677_v56 = vadd.f32 %v1823_v37, %v676_v54 }
 0x1ba   : > { %1935 = vmatprep.subr.bf16.mxu1 %v960_v34  ;;  %v705_v57 = vpack.c.bf16 %v685_v53, %v682_v45  ;;  %v2443_v45 = vmov 0.0  }
 0x1bb   : > { %v931_v36 = vpop.f32.mrb[4].mxu1  ;;  %1936 = vmatpush3.bf16.xpose.msra.mxu1 %v960_v34  ;;  %v704_v59 = vpack.c.bf16 %v677_v56, %v674_v50  ;;  %721 = vst.msk [vmem:[#allocation4] sm:$0xff] %vm712_vm0, %v2443_v45  ;;  %722 = vst.msk [vmem:[#allocation4 + $0x8] sm:$0xff] %vm712_vm0, %v2443_v45 }
 0x1bc   : > { %v933_v38 = vpop.f32.mrb[5].mxu1  ;;  %v932_v42 = vadd.f32 %v931_v36, %v2874_v19  ;;  %723 = vst.msk [vmem:[#allocation4 + $0x10] sm:$0xff] %vm712_vm0, %v2443_v45  ;;  %724 = vst.msk [vmem:[#allocation4 + $0x18] sm:$0xff] %vm712_vm0, %v2443_v45 }
 0x1bd   : > { %v935_v39 = vpop.f32.mrb[6].mxu1  ;;  %v934_v48 = vadd.f32 %v933_v38, %v2876_v28  ;;  %v1933_v1 = vpop.f32.mrb[4].mxu0  ;;  %1943 = vmatprep.mubr.bf16.mxu1 %v704_v59  ;;  %725 = vst.msk [vmem:[#allocation4 + $0x20] sm:$0xff] %vm712_vm0, %v2443_v45  ;;  %726 = vst.msk [vmem:[#allocation4 + $0x28] sm:$0xff] %vm712_vm0, %v2443_v45 }
 0x1be   : > { %v936_v43 = vadd.f32 %v935_v39, %v2874_v19  ;;  %v937_v44 = vpop.f32.mrb[7].mxu1  ;;  %v698_v5 = vadd.f32 %v1933_v1, %v1823_v37  ;;  %v689_v6 = vpop.f32.mrb[5].mxu0  ;;  %727 = vst.msk [vmem:[#allocation4 + $0x30] sm:$0xff] %vm712_vm0, %v2443_v45  ;;  %728 = vst.msk [vmem:[#allocation4 + $0x38] sm:$0xff] %vm712_vm0, %v2443_v45 }
 0x1bf   : > { %v938_v49 = vadd.f32 %v937_v44, %v2876_v28  ;;  %v690_v9 = vadd.f32 %v1823_v37, %v689_v6  ;;  %v1934_v10 = vpop.f32.mrb[6].mxu0 }
 0x1c0   : > { %v961_v52 = vpack.c.bf16 %v936_v43, %v932_v42  ;;  %v701_v12 = vadd.f32 %v1934_v10, %v1823_v37  ;;  %v692_v13 = vpop.f32.mrb[7].mxu0 }
 0x1c1   : > { %v965_v55 = vpack.c.bf16 %v938_v49, %v934_v48  ;;  %v693_v15 = vadd.f32 %v1823_v37, %v692_v13 }
 0x1c2   : > { %1937 = vmatprep.subr.bf16.mxu1 %v961_v52  ;;  %v707_v16 = vpack.c.bf16 %v701_v12, %v698_v5 }
 0x1c3   : > { %v941_v58 = vpop.f32.mrb[8].mxu1  ;;  %1938 = vmatpush3.bf16.xpose.msra.mxu1 %v961_v52  ;;  %v706_v18 = vpack.c.bf16 %v693_v15, %v690_v9 }
 0x1c4   : > { %v943_v60 = vpop.f32.mrb[9].mxu1  ;;  %v942_v2 = vadd.f32 %v941_v58, %v2874_v19 }
 0x1c5   : > { %v945_v63 = vpop.f32.mrb[10].mxu1  ;;  %v944_v7 = vadd.f32 %v943_v60, %v2876_v28 }
 0x1c6   : > { %v946_v3 = vadd.f32 %v945_v63, %v2874_v19  ;;  %v947_v4 = vpop.f32.mrb[11].mxu1 }
 0x1c7   : > { %v948_v8 = vadd.f32 %v947_v4, %v2876_v28 }
 0x1c8   : > { %v962_v11 = vpack.c.bf16 %v946_v3, %v942_v2 }
 0x1c9   : > { %v966_v14 = vpack.c.bf16 %v948_v8, %v944_v7 }
 0x1ca   : > { %1939 = vmatprep.subr.bf16.mxu1 %v962_v11 }
 0x1cb   : > { %v951_v17 = vpop.f32.mrb[12].mxu1  ;;  %1940 = vmatpush3.bf16.xpose.msra.mxu1 %v962_v11 }
 0x1cc   : > { %v953_v20 = vpop.f32.mrb[13].mxu1  ;;  %v952_v22 = vadd.f32 %v951_v17, %v2874_v19 }
 0x1cd   : > { %v955_v21 = vpop.f32.mrb[14].mxu1  ;;  %v954_v25 = vadd.f32 %v953_v20, %v2876_v28 }
 0x1ce   : > { %v956_v23 = vadd.f32 %v955_v21, %v2874_v19  ;;  %v957_v24 = vpop.f32.mrb[15].mxu1  ;;  %v2442_v19 = vmov -inf  }
 0x1cf   : > { %v958_v26 = vadd.f32 %v957_v24, %v2876_v28  ;;  %715 = vst.msk [vmem:[#allocation3 + $0x10] sm:$0xff] %vm712_vm0, %v2442_v19  ;;  %713 = vst.msk [vmem:[#allocation3] sm:$0xff] %vm712_vm0, %v2442_v19 }
 0x1d0   : > { %v963_v29 = vpack.c.bf16 %v956_v23, %v952_v22  ;;  %714 = vst.msk [vmem:[#allocation3 + $0x8] sm:$0xff] %vm712_vm0, %v2442_v19  ;;  %716 = vst.msk [vmem:[#allocation3 + $0x18] sm:$0xff] %vm712_vm0, %v2442_v19 }
 0x1d1   : > { %v967_v27 = vpack.c.bf16 %v958_v26, %v954_v25  ;;  %717 = vst.msk [vmem:[#allocation3 + $0x20] sm:$0xff] %vm712_vm0, %v2442_v19  ;;  %718 = vst.msk [vmem:[#allocation3 + $0x28] sm:$0xff] %vm712_vm0, %v2442_v19 }
 0x1d2   : > { %1941 = vmatprep.subr.bf16.mxu1 %v963_v29  ;;  %719 = vst.msk [vmem:[#allocation3 + $0x30] sm:$0xff] %vm712_vm0, %v2442_v19  ;;  %720 = vst.msk [vmem:[#allocation3 + $0x38] sm:$0xff] %vm712_vm0, %v2442_v19 }
 0x1d3   : > { %1942 = vmatpush3.bf16.xpose.msra.mxu1 %v963_v29 }
 0x1d4   : > { %1951 = vmatprep.subr.bf16.mxu1 %v964_v35 }
 0x1d6   : > { %v2945_v47 = vld [vmem:[#allocation3 + $0x10] sm:$0xff]  ;;  %v2947_v48 = vld [vmem:[#allocation3] sm:$0xff] }
 0x1d7   : > { %v2955_v53 = vld [vmem:[#allocation3 + $0x18] sm:$0xff] }
 0x1d8   : > { %v2980_v1 = vld [vmem:[#allocation3 + $0x20] sm:$0xff]  ;;  %v2986_v4 = vld [vmem:[#allocation3 + $0x28] sm:$0xff] }
 0x1d9   : > { %v2992_v7 = vld [vmem:[#allocation3 + $0x30] sm:$0xff]  ;;  %v3001_v11 = vld [vmem:[#allocation3 + $0x38] sm:$0xff] }
 0x1da   : > { %1944 = vmatmul.mubr.bf16.vlgmr.msra.gmra.mrb[16].mxu1 %v705_v57 }
 0x1db   : > { %1952 = vmatpush3.bf16.msra.mxu1 %v964_v35  ;;  %1947 = vmatprep.mubr.bf16.mxu1 %v706_v18 }
 0x1dc   : > { %1953 = vmatprep.subr.bf16.mxu1 %v965_v55 }
 0x1df   : > { %1954 = vmatpush3.bf16.msra.mxu1 %v965_v55  ;;  %v2962_v55 = vld [vmem:[#allocation3 + $0x8] sm:$0xff] }
 0x1e0   : > { %1955 = vmatprep.subr.bf16.mxu1 %v966_v14 }
 0x1e2   : > { %1948 = vmatmul.mubr.bf16.gmra.mrb[20].mxu1 %v707_v16 }
 0x1e3   : > { %1956 = vmatpush3.bf16.msra.mxu1 %v966_v14 }
 0x1e4   : > { %1957 = vmatprep.subr.bf16.mxu1 %v967_v27 }
 0x1e7   : > { %1958 = vmatpush3.bf16.msra.mxu1 %v967_v27 }
 0x2ad   : > { %v2905_v28 = vpop.f32.mrb[16].mxu1 }
 0x2ae   : > { %v2907_v0 = vpop.f32.mrb[17].mxu1  ;;  %v1044_v30 = vsel %vm1037_vm1, %v2905_v28, -inf }
 0x2af   : > { %1045 = vmax.xlane.f32.xlu1 %v1044_v30  ;;  %v2911_v31 = vpop.f32.mrb[18].mxu1  ;;  %v1038_v32 = vsel %vm1037_vm1, %v2907_v0, -inf }
 0x2b0   : > { %1039 = vmax.xlane.f32.xlu0 %v1038_v32  ;;  %v2915_v33 = vpop.f32.mrb[19].mxu1  ;;  %v1047_v34 = vsel %vm1037_vm1, %v2911_v31, -inf }
 0x2b1   : > { %v1041_v35 = vsel %vm1037_vm1, %v2915_v33, -inf }
 0x2b3   : > { %1048 = vmax.xlane.f32.xlu1 %v1047_v34 }
 0x2b4   : > { %1042 = vmax.xlane.f32.xlu0 %v1041_v35 }
 0x2b5   : > { %v2921_v36 = vpop.f32.mrb[20].mxu1 }
 0x2b6   : > { %v2923_v37 = vpop.f32.mrb[21].mxu1  ;;  %v1056_v43 = vsel %vm1037_vm1, %v2921_v36, -inf }
 0x2b7   : > { %v2925_v38 = vpop.f32.mrb[22].mxu1  ;;  %v1050_v39 = vsel %vm1037_vm1, %v2923_v37, -inf }
 0x2b8   : > { %1051 = vmax.xlane.f32.xlu0 %v1050_v39  ;;  %v2929_v41 = vpop.f32.mrb[23].mxu1  ;;  %v1059_v44 = vsel %vm1037_vm1, %v2925_v38, -inf }
 0x2b9   : > { %v1053_v42 = vsel %vm1037_vm1, %v2929_v41, -inf }
 0x2ba   : > { %1054 = vmax.xlane.f32.xlu1 %v1053_v42 }
 0x2bc   : > { %1057 = vmax.xlane.f32.xlu0 %v1056_v43 }
 0x2be   : > { %1060 = vmax.xlane.f32.xlu1 %v1059_v44 }
 0x33c   : > { %v1046_v49 = vpop.xlane.xlu1 %1045 }
 0x33d   : > { %v2950_v50 = vmax.f32 %v2945_v47, %v1046_v49  ;;  %v1040_v51 = vpop.xlane.xlu0 %1039 }
 0x33e   : > { %v2953_v52 = vmax.f32 %v2947_v48, %v1040_v51 }
 0x33f   : > { %v1080_v54 = vsub.f32 %v2945_v47, %v2950_v50  ;;  %1378 = vst.msk [vmem:[#allocation3 + $0x10] sm:$0xff] %vm712_vm0, %v2950_v50  ;;  %1114 = vperm.xlu1 %2099, %v2950_v50   ;;  %v1166_v47 = vld [vmem:[#allocation4] sm:$0xff] }
 0x340   : > { %v1078_v56 = vsub.f32 %v2947_v48, %v2953_v52  ;;  %1376 = vst.msk [vmem:[#allocation3] sm:$0xff] %vm712_vm0, %v2953_v52  ;;  %v1049_v57 = vpop.xlane.xlu1 %1048  ;;  %1104 = vperm.xlu0 %2098, %v2953_v52  }
 0x341   : > { %v2970_v58 = vmax.f32 %v2955_v53, %v1049_v57  ;;  %v1043_v59 = vpop.xlane.xlu0 %1042 }
 0x342   : > { %v2973_v60 = vmax.f32 %v2962_v55, %v1043_v59 }
 0x343   : > { %v1081_v63 = vsub.f32 %v2955_v53, %v2970_v58  ;;  %1379 = vst.msk [vmem:[#allocation3 + $0x18] sm:$0xff] %vm712_vm0, %v2970_v58  ;;  %1119 = vperm.xlu1 %2099, %v2970_v58  }
 0x344   : > { %v1079_v2 = vsub.f32 %v2962_v55, %v2973_v60  ;;  %1377 = vst.msk [vmem:[#allocation3 + $0x8] sm:$0xff] %vm712_vm0, %v2973_v60  ;;  %v2132_v55 = vld [vmem:[#allocation14] sm:$0xff]  }
 0x345   : > { %v1052_v3 = vpop.xlane.xlu0 %1051  ;;  %1967 = vmatprep.subr.bf16.mxu0 %v2132_v55 }
 0x346   : > { %v2989_v5 = vmax.f32 %v2980_v1, %v1052_v3  ;;  %1968 = vmatpush3.bf16.msra.mxu0 %v2132_v55 }
 0x347   : > { %1109 = vperm.xlu1 %2099, %v2973_v60   ;;  %v1055_v6 = vpop.xlane.xlu1 %1054 }
 0x348   : > { %v1082_v8 = vsub.f32 %v2980_v1, %v2989_v5  ;;  %1380 = vst.msk [vmem:[#allocation3 + $0x20] sm:$0xff] %vm712_vm0, %v2989_v5  ;;  %v2999_v9 = vmax.f32 %v2986_v4, %v1055_v6 }
 0x349   : > { %v1058_v10 = vpop.xlane.xlu0 %1057 }
 0x34a   : > { %v1083_v12 = vsub.f32 %v2986_v4, %v2999_v9  ;;  %1381 = vst.msk [vmem:[#allocation3 + $0x28] sm:$0xff] %vm712_vm0, %v2999_v9  ;;  %v3008_v13 = vmax.f32 %v2992_v7, %v1058_v10  ;;  %v1094_v50 = vmul.f32 1.442695, %v1082_v8 }
 0x34b   : > { %v1061_v14 = vpop.xlane.xlu1 %1060 }
 0x34c   : > { %v1084_v15 = vsub.f32 %v2992_v7, %v3008_v13  ;;  %1382 = vst.msk [vmem:[#allocation3 + $0x30] sm:$0xff] %vm712_vm0, %v3008_v13  ;;  %v3015_v16 = vmax.f32 %v3001_v11, %v1061_v14  ;;  %1134 = vperm.xlu1 %2099, %v3008_v13   ;;  %v1096_v58 = vmul.f32 1.442695, %v1083_v12 }
 0x34e   : > { %v1085_v17 = vsub.f32 %v3001_v11, %v3015_v16  ;;  %1383 = vst.msk [vmem:[#allocation3 + $0x38] sm:$0xff] %vm712_vm0, %v3015_v16 }
 0x350   : > { %1124 = vperm.xlu1 %2099, %v2989_v5   ;;  %v1100_v5 = vmul.f32 1.442695, %v1085_v17 }
 0x354   : > { %1129 = vperm.xlu1 %2099, %v2999_v9   ;;  %v1168_v9 = vld [vmem:[#allocation4 + $0x10] sm:$0xff] }
 0x358   : > { %1139 = vperm.xlu1 %2099, %v3015_v16  }
 0x3be   : > { %v1115_v18 = vpop.permute.xlu1 %1114 }
 0x3bf   : > { %v1144_v20 = vsub.f32 %v2905_v28, %v1115_v18  ;;  %v1105_v21 = vpop.permute.xlu0 %1104 }
 0x3c0   : > { %v1142_v22 = vsub.f32 %v2907_v0, %v1105_v21 }
 0x3c1   : > { %v1154_v23 = vmul.f32 1.442695, %v1144_v20 }
 0x3c2   : > { %v1150_v24 = vmul.f32 1.442695, %v1142_v22  ;;  %v1120_v25 = vpop.permute.xlu1 %1119 }
 0x3c3   : > { %v1145_v26 = vsub.f32 %v2911_v31, %v1120_v25 }
 0x3c4   : > { %2140 = vpow2.f32 %v1150_v24 }
 0x3c5   : > { %v1156_v29 = vmul.f32 1.442695, %v1145_v26  ;;  %2142 = vpow2.f32 %v1154_v23 }
 0x3c6   : > { %v1110_v27 = vpop.permute.xlu1 %1109 }
 0x3c7   : > { %2144 = vpow2.f32 %v1156_v29  ;;  %v1143_v19 = vsub.f32 %v2915_v33, %v1110_v27  ;;  %v1086_v29 = vmul.f32 1.442695, %v1078_v56  ;;  %v1088_v27 = vmul.f32 1.442695, %v1079_v2  ;;  %v1169_v56 = vld [vmem:[#allocation4 + $0x18] sm:$0xff] }
 0x3c9   : > { %v1152_v30 = vmul.f32 1.442695, %v1143_v19  ;;  %v1090_v19 = vmul.f32 1.442695, %v1080_v54 }
 0x3cb   : > { %2146 = vpow2.f32 %v1152_v30  ;;  %v1135_v32 = vpop.permute.xlu1 %1134  ;;  %v1092_v30 = vmul.f32 1.442695, %v1081_v63  ;;  %v1098_v63 = vmul.f32 1.442695, %v1084_v15 }
 0x3cc   : > { %v1148_v28 = vsub.f32 %v2921_v36, %v1135_v32 }
 0x3ce   : > { %v2141_v34 = vpop.eup %2140  ;;  %v1162_v44 = vmul.f32 1.442695, %v1148_v28  ;;  %v1167_v28 = vld [vmem:[#allocation4 + $0x8] sm:$0xff] }
 0x3cf   : > { %v1125_v35 = vpop.permute.xlu1 %1124  ;;  %v1182_v0 = vsel %vm1037_vm1, %v2141_v34, 0.0  ;;  %v2143_v39 = vpop.eup %2142 }
 0x3d0   : > { %v1146_v42 = vsub.f32 %v2923_v37, %v1125_v35  ;;  %1183 = vadd.xlane.f32.xlu1 %v1182_v0  ;;  %v1188_v14 = vsel %vm1037_vm1, %v2143_v39, 0.0  ;;  %v2133_v0 = vld [vmem:[#allocation14 + $0x8] sm:$0xff]  }
 0x3d1   : > { %v2145_v31 = vpop.eup %2144  ;;  %1969 = vmatprep.subr.bf16.mxu0 %v2133_v0 }
 0x3d2   : > { %v1280_v43 = vpack.c.bf16 %v2145_v31, %v2143_v39  ;;  %v1158_v45 = vmul.f32 1.442695, %v1146_v42  ;;  %v1191_v49 = vsel %vm1037_vm1, %v2145_v31, 0.0  ;;  %v1170_v31 = vld [vmem:[#allocation4 + $0x20] sm:$0xff]  ;;  %1970 = vmatpush3.bf16.msra.mxu0 %v2133_v0 }
 0x3d3   : > { %v1130_v33 = vpop.permute.xlu1 %1129 }
 0x3d4   : > { %2148 = vpow2.f32 %v1158_v45  ;;  %v1147_v51 = vsub.f32 %v2929_v41, %v1130_v33  ;;  %1192 = vadd.xlane.f32.xlu1 %v1191_v49  ;;  %v1172_v45 = vld [vmem:[#allocation4 + $0x30] sm:$0xff]  ;;  %v1171_v49 = vld [vmem:[#allocation4 + $0x28] sm:$0xff] }
 0x3d5   : > { %v2147_v57 = vpop.eup %2146  ;;  %2150 = vpow2.f32 %v1162_v44  ;;  %v2134_v33 = vld [vmem:[#allocation14 + $0x10] sm:$0xff]  }
 0x3d6   : > { %v1160_v36 = vmul.f32 1.442695, %v1147_v51  ;;  %v1185_v59 = vsel %vm1037_vm1, %v2147_v57, 0.0  ;;  %v1279_v3 = vpack.c.bf16 %v2147_v57, %v2141_v34  ;;  %1971 = vmatprep.subr.bf16.mxu0 %v2134_v33 }
 0x3d7   : > { %1186 = vadd.xlane.f32.xlu0 %v1185_v59  ;;  %v1140_v37 = vpop.permute.xlu1 %1139  ;;  %1972 = vmatpush3.bf16.msra.mxu0 %v2134_v33 }
 0x3d8   : > { %2152 = vpow2.f32 %v1160_v36  ;;  %v1149_v6 = vsub.f32 %v2925_v38, %v1140_v37  ;;  %1959 = vmatprep.mubr.msk.bf16.mxu1 %vm1037_vm1, %v1279_v3 }
 0x3d9   : > { %1960 = vmatmul.mubr.msk.bf16.vlgmr.msra.gmra.mrb[24].mxu1 %vm1037_vm1, %v1280_v43 }
 0x3da   : > { %v1164_v10 = vmul.f32 1.442695, %v1149_v6  ;;  %v1173_v6 = vld [vmem:[#allocation4 + $0x38] sm:$0xff] }
 0x3db   : > { %1189 = vadd.xlane.f32.xlu0 %v1188_v14 }
 0x3dc   : > { %2154 = vpow2.f32 %v1164_v10  ;;  %v2135_v10 = vld [vmem:[#allocation14 + $0x18] sm:$0xff]  }
 0x3dd   : > { %2156 = vpow2.f32 %v1086_v29  ;;  %1973 = vmatprep.subr.bf16.mxu0 %v2135_v10 }
 0x3de   : > { %v2149_v41 = vpop.eup %2148  ;;  %2158 = vpow2.f32 %v1088_v27  ;;  %1974 = vmatpush3.bf16.msra.mxu0 %v2135_v10 }
 0x3df   : > { %v1194_v18 = vsel %vm1037_vm1, %v2149_v41, 0.0  ;;  %v2151_v20 = vpop.eup %2150  ;;  %2160 = vpow2.f32 %v1090_v19  ;;  %v2139_v19 = vld [vmem:[#allocation14 + $0x38] sm:$0xff]  }
 0x3e0   : > { %1195 = vadd.xlane.f32.xlu0 %v1194_v18  ;;  %v1200_v22 = vsel %vm1037_vm1, %v2151_v20, 0.0  ;;  %2162 = vpow2.f32 %v1092_v30 }
 0x3e1   : > { %2164 = vpow2.f32 %v1094_v50 }
 0x3e2   : > { %v2153_v21 = vpop.eup %2152  ;;  %2166 = vpow2.f32 %v1096_v58 }
 0x3e3   : > { %v1197_v23 = vsel %vm1037_vm1, %v2153_v21, 0.0  ;;  %v1281_v38 = vpack.c.bf16 %v2153_v21, %v2149_v41  ;;  %2168 = vpow2.f32 %v1098_v63 }
 0x3e4   : > { %1201 = vadd.xlane.f32.xlu0 %v1200_v22  ;;  %1198 = vadd.xlane.f32.xlu1 %v1197_v23  ;;  %2170 = vpow2.f32 %v1100_v5  ;;  %v2136_v22 = vld [vmem:[#allocation14 + $0x20] sm:$0xff]  }
 0x3e5   : > { %1963 = vmatprep.mubr.msk.bf16.mxu1 %vm1037_vm1, %v1281_v38  ;;  %1975 = vmatprep.subr.bf16.mxu0 %v2136_v22 }
 0x3e6   : > { %v2155_v24 = vpop.eup %2154  ;;  %1976 = vmatpush3.bf16.msra.mxu0 %v2136_v22 }
 0x3e7   : > { %v1203_v25 = vsel %vm1037_vm1, %v2155_v24, 0.0  ;;  %v1282_v26 = vpack.c.bf16 %v2155_v24, %v2151_v20  ;;  %v2157_v32 = vpop.eup %2156  ;;  %v2137_v24 = vld [vmem:[#allocation14 + $0x28] sm:$0xff]  }
 0x3e8   : > { %1204 = vadd.xlane.f32.xlu1 %v1203_v25  ;;  %v2159_v34 = vpop.eup %2158  ;;  %v1174_v53 = vmul.f32 %v2157_v32, %v1166_v47  ;;  %1977 = vmatprep.subr.bf16.mxu0 %v2137_v24 }
 0x3e9   : > { %1964 = vmatmul.mubr.msk.bf16.gmra.mrb[28].mxu1 %vm1037_vm1, %v1282_v26  ;;  %v2161_v48 = vpop.eup %2160  ;;  %v1175_v4 = vmul.f32 %v2159_v34, %v1167_v28  ;;  %v2138_v26 = vld [vmem:[#allocation14 + $0x30] sm:$0xff]  }
 0x3ea   : > { %v2163_v52 = vpop.eup %2162  ;;  %v1176_v7 = vmul.f32 %v2161_v48, %v1168_v9  ;;  %1978 = vmatpush3.bf16.msra.mxu0 %v2137_v24 }
 0x3eb   : > { %v1177_v2 = vmul.f32 %v2163_v52, %v1169_v56  ;;  %v2165_v39 = vpop.eup %2164  ;;  %1979 = vmatprep.subr.bf16.mxu0 %v2138_v26 }
 0x3ec   : > { %v2167_v16 = vpop.eup %2166  ;;  %v1178_v17 = vmul.f32 %v2165_v39, %v1170_v31 }
 0x3ed   : > { %v2169_v43 = vpop.eup %2168  ;;  %v1179_v36 = vmul.f32 %v2167_v16, %v1171_v49 }
 0x3ee   : > { %v1180_v57 = vmul.f32 %v2169_v43, %v1172_v45  ;;  %v2171_v59 = vpop.eup %2170  ;;  %1980 = vmatpush3.bf16.msra.mxu0 %v2138_v26 }
 0x3ef   : > { %v1181_v20 = vmul.f32 %v2171_v59, %v1173_v6  ;;  %1981 = vmatprep.subr.bf16.mxu0 %v2139_v19 }
 0x3f2   : > { %1982 = vmatpush3.bf16.msra.mxu0 %v2139_v19 }
 0x3f9   : > { %1233 = vperm.xlu1 %2099, %v2157_v32  }
 0x3fa   : > { %1238 = vperm.xlu0 %2098, %v2159_v34  }
 0x3fd   : > { %1243 = vperm.xlu1 %2099, %v2161_v48  }
 0x3fe   : > { %1248 = vperm.xlu0 %2098, %v2163_v52  }
 0x45d   : > { %v1184_v54 = vpop.xlane.xlu1 %1183 }
 0x45e   : > { %v1206_v60 = vadd.f32 %v1184_v54, %v1174_v53 }
 0x460   : > { %1215 = vst.msk [vmem:[#allocation4] sm:$0xff] %vm712_vm0, %v1206_v60 }
 0x461   : > { %v1193_v35 = vpop.xlane.xlu1 %1192 }
 0x462   : > { %v1209_v1 = vadd.f32 %v1193_v35, %v1177_v2 }
 0x464   : > { %1218 = vst.msk [vmem:[#allocation4 + $0x18] sm:$0xff] %vm712_vm0, %v1209_v1  ;;  %v1187_v8 = vpop.xlane.xlu0 %1186 }
 0x465   : > { %v1207_v12 = vadd.f32 %v1187_v8, %v1175_v4 }
 0x467   : > { %1216 = vst.msk [vmem:[#allocation4 + $0x8] sm:$0xff] %vm712_vm0, %v1207_v12  ;;  %v1395_v13 = vld [vmem:[#allocation4] sm:$0xff] }
 0x468   : > { %v1190_v15 = vpop.xlane.xlu0 %1189  ;;  %1405 = vperm.xlu0 %2098, %v1395_v13  }
 0x469   : > { %v1208_v42 = vadd.f32 %v1190_v15, %v1176_v7 }
 0x46b   : > { %1217 = vst.msk [vmem:[#allocation4 + $0x10] sm:$0xff] %vm712_vm0, %v1208_v42  ;;  %v1398_v11 = vld [vmem:[#allocation4 + $0x18] sm:$0xff] }
 0x46c   : > { %1420 = vperm.xlu0 %2098, %v1398_v11  }
 0x46d   : > { %v1196_v44 = vpop.xlane.xlu0 %1195 }
 0x46e   : > { %v1210_v51 = vadd.f32 %v1196_v44, %v1178_v17  ;;  %v1396_v38 = vld [vmem:[#allocation4 + $0x8] sm:$0xff] }
 0x470   : > { %1219 = vst.msk [vmem:[#allocation4 + $0x20] sm:$0xff] %vm712_vm0, %v1210_v51 }
 0x471   : > { %v1202_v3 = vpop.xlane.xlu0 %1201  ;;  %v1199_v37 = vpop.xlane.xlu1 %1198 }
 0x472   : > { %v1212_v14 = vadd.f32 %v1202_v3, %v1180_v57  ;;  %v1211_v41 = vadd.f32 %v1199_v37, %v1179_v36  ;;  %v1397_v18 = vld [vmem:[#allocation4 + $0x10] sm:$0xff] }
 0x473   : > { %1415 = vperm.xlu1 %2099, %v1397_v18  }
 0x474   : > { %1221 = vst.msk [vmem:[#allocation4 + $0x30] sm:$0xff] %vm712_vm0, %v1212_v14  ;;  %1220 = vst.msk [vmem:[#allocation4 + $0x28] sm:$0xff] %vm712_vm0, %v1211_v41 }
 0x475   : > { %v1205_v21 = vpop.xlane.xlu1 %1204 }
 0x476   : > { %v1213_v23 = vadd.f32 %v1205_v21, %v1181_v20 }
 0x477   : > { %1410 = vperm.xlu1 %2099, %v1396_v38   ;;  %v1399_v29 = vld [vmem:[#allocation4 + $0x20] sm:$0xff] }
 0x478   : > { %1222 = vst.msk [vmem:[#allocation4 + $0x38] sm:$0xff] %vm712_vm0, %v1213_v23 }
 0x479   : > { %v1239_v54 = vpop.permute.xlu0 %1238  ;;  %v1234_v58 = vpop.permute.xlu1 %1233 }
 0x47a   : > { %v1272_v13 = vmul.f32 0.0, %v1239_v54  ;;  %v1271_v15 = vmul.f32 0.0, %v1234_v58 }
 0x47b   : > { %v1401_v25 = vld [vmem:[#allocation4 + $0x30] sm:$0xff]  ;;  %v1400_v30 = vld [vmem:[#allocation4 + $0x28] sm:$0xff] }
 0x47c   : > { %1435 = vperm.xlu1 %2099, %v1401_v25  }
 0x47d   : > { %v1249_v56 = vpop.permute.xlu0 %1248  ;;  %v1244_v63 = vpop.permute.xlu1 %1243 }
 0x47e   : > { %v1274_v1 = vmul.f32 0.0, %v1249_v56  ;;  %v1273_v5 = vmul.f32 0.0, %v1244_v63  ;;  %v2188_v56 = vld [vmem:[%s2767_s12] sm:$0xff]  ;;  %v2189_v63 = vld [vmem:[%s2767_s12 + $0x18] sm:$0xff] }
 0x47f   : > { %v1402_v27 = vld [vmem:[#allocation4 + $0x38] sm:$0xff] }
 0x480   : > { %1425 = vperm.xlu1 %2099, %v1399_v29   ;;  %1440 = vperm.xlu0 %2098, %v1402_v27  }
 0x484   : > { %1253 = vperm.xlu1 %2099, %v2165_v39   ;;  %1430 = vperm.xlu0 %2098, %v1400_v30  }
 0x488   : > { %1263 = vperm.xlu1 %2099, %v2169_v43   ;;  %1258 = vperm.xlu0 %2098, %v2167_v16  }
 0x48c   : > { %1268 = vperm.xlu0 %2098, %v2171_v59  }
 0x4ac   : > { %v1961_v32 = vpop.f32.mrb[24].mxu1 }
 0x4ad   : > { %v1329_v34 = vpop.f32.mrb[25].mxu1  ;;  %v1362_v9 = vadd.f32 %v1961_v32, %v1273_v5  ;;  %v1854_v32 = vld [vmem:[%s3200_s5] ss:$0 sm:$0xff] }
 0x4ae   : > { %v1962_v48 = vpop.f32.mrb[26].mxu1  ;;  %v1360_v16 = vadd.f32 %v1329_v34, %v1271_v15 }
 0x4af   : > { %v1332_v52 = vpop.f32.mrb[27].mxu1  ;;  %v1363_v12 = vadd.f32 %v1962_v48, %v1274_v1 }
 0x4b0   : > { %v1361_v17 = vadd.f32 %v1332_v52, %v1272_v13 }
 0x4bc   : > { %v1965_v55 = vpop.f32.mrb[28].mxu1 }
 0x4bd   : > { %v1345_v47 = vpop.f32.mrb[29].mxu1 }
 0x4be   : > { %v1966_v50 = vpop.f32.mrb[30].mxu1 }
 0x4bf   : > { %v1348_v53 = vpop.f32.mrb[31].mxu1 }
 0x4e7   : > { %v1406_v60 = vpop.permute.xlu0 %1405 }
 0x4eb   : > { %v1421_v2 = vpop.permute.xlu0 %1420 }
 0x4ec   : > { %2172 = vrcp.f32 %v1421_v2 }
 0x4f2   : > { %v1416_v28 = vpop.permute.xlu1 %1415 }
 0x4f3   : > { %2174 = vrcp.f32 %v1416_v28  ;;  %v2190_v28 = vld [vmem:[%s2767_s12 + $0x8] sm:$0xff] }
 0x4f4   : > { %2176 = vrcp.f32 %v1406_v60 }
 0x4f6   : > { %v1411_v35 = vpop.permute.xlu1 %1410  ;;  %v2173_v4 = vpop.eup %2172 }
 0x4f7   : > { %2178 = vrcp.f32 %v1411_v35  ;;  %v1450_v0 = vmul.f32 %v2173_v4, %v1363_v12 }
 0x4fb   : > { %v1436_v8 = vpop.permute.xlu1 %1435 }
 0x4fd   : > { %v2175_v7 = vpop.eup %2174 }
 0x4fe   : > { %v1448_v39 = vmul.f32 %v2175_v7, %v1362_v9  ;;  %v2177_v42 = vpop.eup %2176 }
 0x4ff   : > { %v1441_v31 = vpop.permute.xlu0 %1440  ;;  %v1426_v11 = vpop.permute.xlu1 %1425  ;;  %v1444_v45 = vmul.f32 %v2177_v42, %v1360_v16 }
 0x500   : > { %v1460_v43 = vpack.c.bf16 %v1450_v0, %v1448_v39  ;;  %2180 = vrcp.f32 %v1426_v11 }
 0x501   : > { %v2179_v44 = vpop.eup %2178  ;;  %2182 = vrcp.f32 %v1436_v8 }
 0x502   : > { %v1446_v49 = vmul.f32 %v2179_v44, %v1361_v17 }
 0x503   : > { %v1431_v33 = vpop.permute.xlu0 %1430  ;;  %v1254_v51 = vpop.permute.xlu1 %1253 }
 0x504   : > { %2184 = vrcp.f32 %v1431_v33  ;;  %v1459_v57 = vpack.c.bf16 %v1446_v49, %v1444_v45  ;;  %v1275_v37 = vmul.f32 0.0, %v1254_v51 }
 0x505   : > { %2186 = vrcp.f32 %v1441_v31 }
 0x506   : > { %1983 = vmatprep.mubr.bf16.mxu0 %v1459_v57  ;;  %v1364_v21 = vadd.f32 %v1345_v47, %v1275_v37 }
 0x507   : > { %v1259_v36 = vpop.permute.xlu0 %1258  ;;  %1984 = vmatmul.mubr.bf16.vlgmr.msra.gmra.mrb[8].mxu0 %v1460_v43  ;;  %v1264_v59 = vpop.permute.xlu1 %1263 }
 0x508   : > { %v1277_v3 = vmul.f32 0.0, %v1264_v59  ;;  %v1276_v6 = vmul.f32 0.0, %v1259_v36 }
 0x50a   : > { %v2181_v14 = vpop.eup %2180  ;;  %v1366_v41 = vadd.f32 %v1965_v55, %v1277_v3  ;;  %v1365_v22 = vadd.f32 %v1348_v53, %v1276_v6 }
 0x50b   : > { %v1269_v10 = vpop.permute.xlu0 %1268  ;;  %v2183_v20 = vpop.eup %2182  ;;  %v1452_v25 = vmul.f32 %v2181_v14, %v1364_v21 }
 0x50c   : > { %v1278_v18 = vmul.f32 0.0, %v1269_v10  ;;  %v1456_v29 = vmul.f32 %v2183_v20, %v1366_v41 }
 0x50e   : > { %v2185_v23 = vpop.eup %2184  ;;  %v1367_v38 = vadd.f32 %v1966_v50, %v1278_v18 }
 0x50f   : > { %v2187_v24 = vpop.eup %2186  ;;  %v1454_v26 = vmul.f32 %v2185_v23, %v1365_v22 }
 0x510   : > { %v1458_v27 = vmul.f32 %v2187_v24, %v1367_v38 }
 0x511   : > { %v1461_v19 = vpack.c.bf16 %v1454_v26, %v1452_v25 }
 0x512   : > { %v1462_v30 = vpack.c.bf16 %v1458_v27, %v1456_v29 }
 0x513   : > { %1987 = vmatprep.mubr.bf16.mxu0 %v1461_v19 }
 0x514   : > { %1988 = vmatmul.mubr.bf16.gmra.mrb[12].mxu0 %v1462_v30 }
 0x5da   : > { %v1985_v34 = vpop.f32.mrb[8].mxu0 }
 0x5db   : > { %v1577_v48 = vadd.f32 %v1985_v34, %v1854_v32  ;;  %v1568_v52 = vpop.f32.mrb[9].mxu0 }
 0x5dc   : > { %v1569_v55 = vadd.f32 %v1854_v32, %v1568_v52  ;;  %v1986_v47 = vpop.f32.mrb[10].mxu0 }
 0x5dd   : > { %v1609_v50 = vadd.f32 %v1577_v48, %v2823_v40  ;;  %v1580_v53 = vadd.f32 %v1986_v47, %v1854_v32  ;;  %v1571_v54 = vpop.f32.mrb[11].mxu0 }
 0x5de   : > { %v1607_v58 = vadd.f32 %v2188_v56, %v1569_v55  ;;  %v1572_v60 = vadd.f32 %v1854_v32, %v1571_v54 }
 0x5df   : > { %1617 = vst [vmem:[%s511_s28 + $0x10] sm:$0xff] %v1609_v50  ;;  %v1610_v2 = vadd.f32 %v2189_v63, %v1580_v53 }
 0x5e0   : > { %1615 = vst [vmem:[%s511_s28] sm:$0xff] %v1607_v58  ;;  %v1608_v35 = vadd.f32 %v2190_v28, %v1572_v60 }
 0x5e1   : > { %1618 = vst [vmem:[%s511_s28 + $0x18] sm:$0xff] %v1610_v2 }
 0x5e2   : > { %1616 = vst [vmem:[%s511_s28 + $0x8] sm:$0xff] %v1608_v35 }
 0x5e7   : > { %v1989_v1 = vpop.f32.mrb[12].mxu0 }
 0x5e8   : > { %v1593_v5 = vadd.f32 %v1989_v1, %v1854_v32  ;;  %v1584_v40 = vpop.f32.mrb[13].mxu0 }
 0x5e9   : > { %v1585_v4 = vadd.f32 %v1854_v32, %v1584_v40  ;;  %v1990_v8 = vpop.f32.mrb[14].mxu0 }
 0x5ea   : > { %v1613_v9 = vadd.f32 %v1593_v5, %v2848_v61  ;;  %v1596_v12 = vadd.f32 %v1990_v8, %v1854_v32  ;;  %v1587_v7 = vpop.f32.mrb[15].mxu0  ;;  %v2191_v61 = vld [vmem:[%s2767_s12 + $0x28] sm:$0xff] }
 0x5eb   : > { %v1611_v13 = vadd.f32 %v1585_v4, %v2829_v46  ;;  %v1588_v15 = vadd.f32 %v1854_v32, %v1587_v7 }
 0x5ec   : > { %1621 = vst [vmem:[%s511_s28 + $0x30] sm:$0xff] %v1613_v9  ;;  %v1614_v0 = vadd.f32 %v1596_v12, %v2851_v62 }
 0x5ed   : > { %1619 = vst [vmem:[%s511_s28 + $0x20] sm:$0xff] %v1611_v13  ;;  %v1612_v39 = vadd.f32 %v2191_v61, %v1588_v15 }
 0x5ee   : > { %1622 = vst [vmem:[%s511_s28 + $0x38] sm:$0xff] %v1614_v0 }
 0x5ef   : > { %1620 = vst [vmem:[%s511_s28 + $0x28] sm:$0xff] %v1612_v39 }
 0x5f0   : > { %2349 = shalt.err (!%p2346_p12)
}
 0x5f1   : > { %s2350_s12 = scalar_lea.hbm %s3094_s16, 1024  ;;  %s2354_s20 = scalar_lea.hbm %s3202_s26, 2048 }
 0x5f2   : > { %p2351_p6 = scmp.ne.s32.totalorder %s3094_s16, %s2350_s12  ;;  %p2355_p0 = scmp.lt.u32.totalorder %s3094_s16, %s3202_s26 }
 0x5f3   : > { %p2356_p2 = scmp.lt.u32.totalorder %s2354_s20, %s2350_s12  ;;  %p2358_p8 = scmp.lt.u32.totalorder %s2350_s12, %s3094_s16 }
 0x5f4   : > { %p2352_p7 = pnand %p2351_p6, %p2661_p3 }
 0x5f5   : > { %p2357_p4 = por %p2356_p2, %p2355_p0 }
 0x5f6   : > { %p2353_p9 = pneg %p2352_p7 }
 0x5f7   : > { %p2359_p1 = por %p2358_p8, %p2357_p4 }
 0x5f9   : > { %p2360_p13 = pnand %p2359_p1, %p2353_p9 }
 0x5fb   : > { %2363 = shalt.err (!%p2360_p13)
}
 0x5fc   : > { %s2445_s28 = smov 128   ;;  %s2446_s21 = smov 8  }
 0x5fd   : > { %2007 = dma.vmem_to_hbm [thread:$0]  (%p2661_p3), %s3087_s19, 1024, %s3094_s16, %s1624_s8, %s2445_s28, %s2445_s28, %s2446_s21  }
 0x5fe PF: > { %s3203_s25 = sld [smem:[#allocation21_spill]]  ;;  %s3204_s4 = sld [smem:[#allocation22_spill]] }
 0x5ff   : > { %p3206_p11 = scmp.ge.s32.totalorder %s2430_s18, 2 }
 0x604   : > { %s1654_s13 = sand.u32 1, %s3203_s25   ;;  %p3205_p10 = scmp.ne.s32.totalorder %s3204_s4, 0 }
 0x605   : > { %s1655_s27 = scalar_lea.sflag [#allocation8], %s1654_s13 }
 0x606   : > { %p2027_p5 = pnand %p3206_p11, %p3205_p10 }
 0x608   : > { %2405 = dma.done.wait (!%p2027_p5), %s1655_s27, 1024  }
 0x609   : > { %2407 = vsyncadd (!%p2027_p5), %s1655_s27, 4294966272  ;;  %s30_s18 = sadd.s32 1, %s2430_s18   ;;  %s3207_s13 = smov %s2414_s14 }
 0x60a   : > { %p27_p12 = scmp.ge.s32.totalorder %s30_s18, 4   ;;  %s3208_s14 = smov %s2418_s15 }
 0x60b   : > { %s3209_s15 = smov %s2670_s29  ;;  %s3210_s16 = smov %s2426_s17 }
 0x60c   : > { %s3211_s17 = smov %s3213_s24  ;;  %29 = sbr.rel (!%p27_p12) target bundleno = 17 (0x11), region = 144 }
 0x613   :  { %1660 = vsyncpa [#allocation7], 1 }
 0x614   :  { %1662 = vsyncpa [#allocation7 + $0x1], 1 }
 0x615   :  { %1663 = vsyncpa [#allocation10], 1 }
 0x616   :  { %1665 = vsyncpa [#allocation10 + $0x1], 1 }
 0x617   :  { %1666 = vsyncpa [#allocation13], 1 }
 0x618   :  { %1667 = vsyncpa [#allocation8], 1 }
 0x619   :  { %1669 = vsyncpa [#allocation8 + $0x1], 1 }

</bundles_post_ra>
